<compile_context>
chip_gen: v7x
topology: tpu7x:2x2x1
jax: 0.10.0
libtpu: 0.0.40
codegen_flags: <defaults>
</compile_context>

<pallas_src>
import math

import numpy as np
import jax
import jax.numpy as jnp
from jax.experimental import pallas as pl
from jax.experimental.pallas import tpu as pltpu


# --------------------- host-side weight preprocessing -----------------------

def _banded_conv_matrices(w, in_w_lanes, out_w, in_stride):
    """w: (Cout, Cin, KH, KW) -> (KH, Cin*in_w_lanes, Cout*out_w) float32.

    B[kh, c*in_w_lanes + in_stride*(ow+kw), o*out_w + ow] = w[o, c, kh, kw]
    so that   sum_kh  act[kh:kh+OH, :] @ B[kh]   is the valid conv, with the
    activation laid out as (H, Cin*in_w_lanes) and the output as
    (OH, Cout*out_w).  in_stride=2 reads the un-compacted (post-pool) lanes.
    """
    w = np.asarray(w, np.float32)
    cout, cin, kh_n, kw_n = w.shape
    B = np.zeros((kh_n, cin * in_w_lanes, cout * out_w), np.float32)
    ow = np.arange(out_w)
    for kh in range(kh_n):
        for o in range(cout):
            for c in range(cin):
                for kw in range(kw_n):
                    B[kh, c * in_w_lanes + in_stride * (ow + kw),
                      o * out_w + ow] = w[o, c, kh, kw]
    return B


def _fc1_matrices(fc1_w):
    """fc1_w: (120, 400), PyTorch flatten order (c, h, w) with c<16, h,w<5.

    Returns (5, 160, 120): F[ph, c*10 + 2*pw, :] = fc1_w[:, c*25 + ph*5 + pw]
    so that  sum_ph  pooled_row[ph] @ F[ph]  == flatten(x) @ fc1_w.T,
    reading the un-compacted conv2/pool2 lane layout (Cout=16, OW=10).
    """
    fc1_w = np.asarray(fc1_w, np.float32)
    F = np.zeros((5, 160, 120), np.float32)
    for ph in range(5):
        for c in range(16):
            for pw in range(5):
                F[ph, c * 10 + 2 * pw, :] = fc1_w[:, c * 25 + ph * 5 + pw]
    return F


def _lane_shift_matrix(n, s):
    """(y @ S)[:, l] = y[:, l+s]  (zero beyond the edge)."""
    S = np.zeros((n, n), np.float32)
    idx = np.arange(n - s)
    S[idx + s, idx] = 1.0
    return S


def _row_shift_matrix(n, s):
    """(S @ y)[r, :] = y[r+s, :]  (zero beyond the edge)."""
    S = np.zeros((n, n), np.float32)
    idx = np.arange(n - s)
    S[idx, idx + s] = 1.0
    return S


def prepare_params(params):
    """Build the kernel-ready (banded / reordered / bf16) weight set."""
    bf16 = jnp.bfloat16
    f32 = jnp.float32
    return {
        # conv1: 3->6, 5x5 on a (32, 3*32) activation -> (28, 6*28)
        'B1': jnp.asarray(_banded_conv_matrices(params['conv1_w'], 32, 28, 1), bf16),
        'b1': jnp.asarray(np.repeat(np.asarray(params['conv1_b']), 28)[None], f32),
        'SL1': jnp.asarray(_lane_shift_matrix(168, 1), f32),
        'SR1': jnp.asarray(_row_shift_matrix(28, 1), f32),
        # conv2: 6->16, 5x5 on the un-compacted pooled (28, 6*28) -> (20, 16*10)
        'B2': jnp.asarray(_banded_conv_matrices(params['conv2_w'], 28, 10, 2), bf16),
        'b2': jnp.asarray(np.repeat(np.asarray(params['conv2_b']), 10)[None], f32),
        'SL2': jnp.asarray(_lane_shift_matrix(160, 1), f32),
        'SR2': jnp.asarray(_row_shift_matrix(20, 2), f32),
        # fully connected layers
        'F1': jnp.asarray(_fc1_matrices(params['fc1_w']), bf16),
        'fb1': jnp.asarray(params['fc1_b'], f32)[None],
        'W2': jnp.asarray(params['fc2_w'].T, bf16),
        'fb2': jnp.asarray(params['fc2_b'], f32)[None],
        'W3': jnp.asarray(params['fc3_w'].T, bf16),
        'fb3': jnp.asarray(params['fc3_b'], f32)[None],
    }


# ------------------------------ Pallas kernel -------------------------------

def _lenet_kernel(x_ref, B1_ref, b1_ref, SL1_ref, SR1_ref,
                  B2_ref, b2_ref, SL2_ref, SR2_ref,
                  F1_ref, fb1_ref, W2_ref, fb2_ref, W3_ref, fb3_ref,
                  o_ref):
    f32 = jnp.float32
    bf16 = jnp.bfloat16

    def mm(a, b):
        return jnp.dot(a, b, preferred_element_type=f32)

    # input sample: rows = H (32), lanes = (Cin=3, W=32) -> 96
    a0 = x_ref[0].astype(bf16)                               # (32, 96)

    # ---- conv1 (5x5, 3->6): 5 banded matmuls; lanes = (Cout=6, OW=28) ----
    y = mm(a0[0:28, :], B1_ref[0])
    for kh in range(1, 5):
        y = y + mm(a0[kh:kh + 28, :], B1_ref[kh])
    y = jnp.maximum(y + b1_ref[...], 0.0)                    # bias + ReLU (f32)

    # fused 2x2 maxpool, kept un-compacted (valid at even rows / even lanes)
    y = jnp.maximum(y, mm(y, SL1_ref[...]))                  # pair-max along W
    a1 = jnp.maximum(y, mm(SR1_ref[...], y))                 # pair-max along H
    a1 = a1.astype(bf16)                                     # (28, 168)

    # ---- conv2 (5x5, 6->16): lanes = (Cout=16, OW=10), rows un-compacted ----
    y = mm(a1[0:20, :], B2_ref[0])
    for kh in range(1, 5):
        y = y + mm(a1[2 * kh:2 * kh + 20, :], B2_ref[kh])
    y = jnp.maximum(y + b2_ref[...], 0.0)                    # (20, 160)

    y = jnp.maximum(y, mm(y, SL2_ref[...]))                  # pool along W
    a2 = jnp.maximum(y, mm(SR2_ref[...], y))                 # pool along H
    a2 = a2.astype(bf16)                                     # (20, 160)

    # ---- fc1 (400->120): sum over the 5 valid pooled rows ----
    h = mm(a2[0:1, :], F1_ref[0])
    for ph in range(1, 5):
        h = h + mm(a2[4 * ph:4 * ph + 1, :], F1_ref[ph])
    h = jnp.maximum(h + fb1_ref[...], 0.0).astype(bf16)      # (1, 120)

    # ---- fc2, fc3 ----
    h = jnp.maximum(mm(h, W2_ref[...]) + fb2_ref[...], 0.0).astype(bf16)  # (1, 84)
    o_ref[0] = (mm(h, W3_ref[...]) + fb3_ref[...]).astype(o_ref.dtype)    # (1, 10)


# ------------------------------ forward wrapper ------------------------------

_WEIGHT_ORDER = ['B1', 'b1', 'SL1', 'SR1', 'B2', 'b2', 'SL2', 'SR2',
                 'F1', 'fb1', 'W2', 'fb2', 'W3', 'fb3']


def convnet_forward(x_nchw, prep):
    N, C, H, W = x_nchw.shape
    assert (C, H, W) == (3, 32, 32), "LeNet expects 3x32x32 inputs"

    # (N, C, H, W) -> (N, H, C*W): rows = H, lanes = (Cin, W)
    x = jnp.transpose(x_nchw, (0, 2, 1, 3)).reshape(N, 32, 96)

    weights = [prep[k] for k in _WEIGHT_ORDER]

    def whole(a):
        return pl.BlockSpec(a.shape, lambda n: (0,) * a.ndim)

    out = pl.pallas_call(
        _lenet_kernel,
        out_shape=jax.ShapeDtypeStruct((N, 1, 10), jnp.float32),
        grid=(N,),
        in_specs=[pl.BlockSpec((1, 32, 96), lambda n: (n, 0, 0))]
                 + [whole(a) for a in weights],
        out_specs=pl.BlockSpec((1, 1, 10), lambda n: (n, 0, 0)),
        compiler_params=pltpu.CompilerParams(
            dimension_semantics=("parallel",),
            vmem_limit_bytes=32 * 1024 * 1024),
    )(x, *weights)
    return out.reshape(N, 10)


# ------------------------- deterministic parameters --------------------------

def init_params(key):
    ks = jax.random.split(key, 10)

    def unif(k, shape, fan_in):
        bound = 1.0 / math.sqrt(fan_in)
        return jax.random.uniform(k, shape, jnp.float32, -bound, bound)

    return {
        'conv1_w': unif(ks[0], (6, 3, 5, 5), 3 * 5 * 5),
        'conv1_b': unif(ks[1], (6,), 3 * 5 * 5),
        'conv2_w': unif(ks[2], (16, 6, 5, 5), 6 * 5 * 5),
        'conv2_b': unif(ks[3], (16,), 6 * 5 * 5),
        'fc1_w': unif(ks[4], (120, 400), 400),
        'fc1_b': unif(ks[5], (120,), 400),
        'fc2_w': unif(ks[6], (84, 120), 120),
        'fc2_b': unif(ks[7], (84,), 120),
        'fc3_w': unif(ks[8], (10, 84), 84),
        'fc3_b': unif(ks[9], (10,), 84),
    }


# ---------------------------- pure-JAX reference -----------------------------

def reference_forward(x, params):
    def pool(z):  # NCHW 2x2 max pool
        return jax.lax.reduce_window(z, -jnp.inf, jax.lax.max,
                                     (1, 1, 2, 2), (1, 1, 2, 2), 'VALID')

    dn = ('NCHW', 'OIHW', 'NCHW')
    y = jax.lax.conv_general_dilated(x, params['conv1_w'], (1, 1), 'VALID',
                                     dimension_numbers=dn)
    y = pool(jax.nn.relu(y + params['conv1_b'][None, :, None, None]))
    y = jax.lax.conv_general_dilated(y, params['conv2_w'], (1, 1), 'VALID',
                                     dimension_numbers=dn)
    y = pool(jax.nn.relu(y + params['conv2_b'][None, :, None, None]))
    y = y.reshape(y.shape[0], -1)
    y = jax.nn.relu(y @ params['fc1_w'].T + params['fc1_b'])
    y = jax.nn.relu(y @ params['fc2_w'].T + params['fc2_b'])
    return y @ params['fc3_w'].T + params['fc3_b']


# ----------------------------------- main ------------------------------------

if __name__ == "__main__":
    key = jax.random.PRNGKey(0)
    k_params, k_x = jax.random.split(key)
    params = init_params(k_params)
    prep = prepare_params(params)

    # Input must be 32x32 so the flatten matches fc1 (16*5*5).
    x = jax.random.normal(k_x, (2, 3, 32, 32), dtype=jnp.float32)

    out = jax.jit(convnet_forward)(x, prep)
    out = jax.block_until_ready(out)
    assert out.shape == (2, 10)

    ref = jax.block_until_ready(reference_forward(x, params))
    # bf16 MXU operands (f32 accumulation) -> tiny deviation vs the f32 reference.
    assert jnp.allclose(out, ref, rtol=1e-2, atol=1e-2), "mismatch vs reference"

    print("KERNEL_OK")
</pallas_src>

<mosaic_0001>
module attributes {stable_mosaic.version = 11 : i64} {
  func.func @_lenet_kernel(%arg0: i32, %arg1: memref<1x32x96xf32, #tpu.memory_space<vmem>>, %arg2: memref<5x96x168xbf16, #tpu.memory_space<vmem>>, %arg3: memref<1x168xf32, #tpu.memory_space<vmem>>, %arg4: memref<168x168xf32, #tpu.memory_space<vmem>>, %arg5: memref<28x28xf32, #tpu.memory_space<vmem>>, %arg6: memref<5x168x160xbf16, #tpu.memory_space<vmem>>, %arg7: memref<1x160xf32, #tpu.memory_space<vmem>>, %arg8: memref<160x160xf32, #tpu.memory_space<vmem>>, %arg9: memref<20x20xf32, #tpu.memory_space<vmem>>, %arg10: memref<5x160x120xbf16, #tpu.memory_space<vmem>>, %arg11: memref<1x120xf32, #tpu.memory_space<vmem>>, %arg12: memref<120x84xbf16, #tpu.memory_space<vmem>>, %arg13: memref<1x84xf32, #tpu.memory_space<vmem>>, %arg14: memref<84x10xbf16, #tpu.memory_space<vmem>>, %arg15: memref<1x10xf32, #tpu.memory_space<vmem>>, %arg16: memref<1x1x10xf32, #tpu.memory_space<vmem>>) attributes {dimension_semantics = [#tpu.dimension_semantics<parallel>], iteration_bounds = array<i64: 2>, scalar_prefetch = 0 : i64, scratch_operands = 0 : i64, tpu.core_type = #tpu.core_type<tc>, window_params = [{transform_indices = @transform_0, window_bounds = array<i64: 1, 32, 96>}, {pipeline_mode = #tpu.pipeline_mode<synchronous>, transform_indices = @transform_1, window_bounds = array<i64: 5, 96, 168>}, {pipeline_mode = #tpu.pipeline_mode<synchronous>, transform_indices = @transform_2, window_bounds = array<i64: 1, 168>}, {pipeline_mode = #tpu.pipeline_mode<synchronous>, transform_indices = @transform_3, window_bounds = array<i64: 168, 168>}, {pipeline_mode = #tpu.pipeline_mode<synchronous>, transform_indices = @transform_4, window_bounds = array<i64: 28, 28>}, {pipeline_mode = #tpu.pipeline_mode<synchronous>, transform_indices = @transform_5, window_bounds = array<i64: 5, 168, 160>}, {pipeline_mode = #tpu.pipeline_mode<synchronous>, transform_indices = @transform_6, window_bounds = array<i64: 1, 160>}, {pipeline_mode = #tpu.pipeline_mode<synchronous>, transform_indices = @transform_7, window_bounds = array<i64: 160, 160>}, {pipeline_mode = #tpu.pipeline_mode<synchronous>, transform_indices = @transform_8, window_bounds = array<i64: 20, 20>}, {pipeline_mode = #tpu.pipeline_mode<synchronous>, transform_indices = @transform_9, window_bounds = array<i64: 5, 160, 120>}, {pipeline_mode = #tpu.pipeline_mode<synchronous>, transform_indices = @transform_10, window_bounds = array<i64: 1, 120>}, {pipeline_mode = #tpu.pipeline_mode<synchronous>, transform_indices = @transform_11, window_bounds = array<i64: 120, 84>}, {pipeline_mode = #tpu.pipeline_mode<synchronous>, transform_indices = @transform_12, window_bounds = array<i64: 1, 84>}, {pipeline_mode = #tpu.pipeline_mode<synchronous>, transform_indices = @transform_13, window_bounds = array<i64: 84, 10>}, {pipeline_mode = #tpu.pipeline_mode<synchronous>, transform_indices = @transform_14, window_bounds = array<i64: 1, 10>}, {transform_indices = @transform_15, window_bounds = array<i64: 1, 1, 10>}]} {
    %c0 = arith.constant 0 : index
    %c0_0 = arith.constant 0 : index
    %c0_1 = arith.constant 0 : index
    %0 = vector.load %arg1[%c0, %c0_0, %c0_1] : memref<1x32x96xf32, #tpu.memory_space<vmem>>, vector<1x32x96xf32>
    %1 = vector.shape_cast %0 : vector<1x32x96xf32> to vector<32x96xf32>
    %2 = arith.truncf %1 : vector<32x96xf32> to vector<32x96xbf16>
    %3 = vector.extract_strided_slice %2 {offsets = [0, 0], sizes = [28, 96], strides = [1, 1]} : vector<32x96xbf16> to vector<28x96xbf16>
    %c0_2 = arith.constant 0 : index
    %c0_3 = arith.constant 0 : index
    %c0_4 = arith.constant 0 : index
    %4 = vector.load %arg2[%c0_2, %c0_3, %c0_4] : memref<5x96x168xbf16, #tpu.memory_space<vmem>>, vector<1x96x168xbf16>
    %5 = vector.shape_cast %4 : vector<1x96x168xbf16> to vector<96x168xbf16>
    %cst = arith.constant dense<0.000000e+00> : vector<28x168xf32>
    %6 = tpu.matmul %3, %5, %cst {dimension_numbers = #tpu.dot_dimension_numbers<[1], [0], [0], [1], [0, 0, 1, 1], [], []>} : vector<28x96xbf16>, vector<96x168xbf16>, vector<28x168xf32> -> vector<28x168xf32>
    %7 = vector.extract_strided_slice %2 {offsets = [1, 0], sizes = [28, 96], strides = [1, 1]} : vector<32x96xbf16> to vector<28x96xbf16>
    %c1 = arith.constant 1 : index
    %c0_5 = arith.constant 0 : index
    %c0_6 = arith.constant 0 : index
    %8 = vector.load %arg2[%c1, %c0_5, %c0_6] : memref<5x96x168xbf16, #tpu.memory_space<vmem>>, vector<1x96x168xbf16>
    %9 = vector.shape_cast %8 : vector<1x96x168xbf16> to vector<96x168xbf16>
    %cst_7 = arith.constant dense<0.000000e+00> : vector<28x168xf32>
    %10 = tpu.matmul %7, %9, %cst_7 {dimension_numbers = #tpu.dot_dimension_numbers<[1], [0], [0], [1], [0, 0, 1, 1], [], []>} : vector<28x96xbf16>, vector<96x168xbf16>, vector<28x168xf32> -> vector<28x168xf32>
    %11 = arith.addf %6, %10 : vector<28x168xf32>
    %12 = vector.extract_strided_slice %2 {offsets = [2, 0], sizes = [28, 96], strides = [1, 1]} : vector<32x96xbf16> to vector<28x96xbf16>
    %c2 = arith.constant 2 : index
    %c0_8 = arith.constant 0 : index
    %c0_9 = arith.constant 0 : index
    %13 = vector.load %arg2[%c2, %c0_8, %c0_9] : memref<5x96x168xbf16, #tpu.memory_space<vmem>>, vector<1x96x168xbf16>
    %14 = vector.shape_cast %13 : vector<1x96x168xbf16> to vector<96x168xbf16>
    %cst_10 = arith.constant dense<0.000000e+00> : vector<28x168xf32>
    %15 = tpu.matmul %12, %14, %cst_10 {dimension_numbers = #tpu.dot_dimension_numbers<[1], [0], [0], [1], [0, 0, 1, 1], [], []>} : vector<28x96xbf16>, vector<96x168xbf16>, vector<28x168xf32> -> vector<28x168xf32>
    %16 = arith.addf %11, %15 : vector<28x168xf32>
    %17 = vector.extract_strided_slice %2 {offsets = [3, 0], sizes = [28, 96], strides = [1, 1]} : vector<32x96xbf16> to vector<28x96xbf16>
    %c3 = arith.constant 3 : index
    %c0_11 = arith.constant 0 : index
    %c0_12 = arith.constant 0 : index
    %18 = vector.load %arg2[%c3, %c0_11, %c0_12] : memref<5x96x168xbf16, #tpu.memory_space<vmem>>, vector<1x96x168xbf16>
    %19 = vector.shape_cast %18 : vector<1x96x168xbf16> to vector<96x168xbf16>
    %cst_13 = arith.constant dense<0.000000e+00> : vector<28x168xf32>
    %20 = tpu.matmul %17, %19, %cst_13 {dimension_numbers = #tpu.dot_dimension_numbers<[1], [0], [0], [1], [0, 0, 1, 1], [], []>} : vector<28x96xbf16>, vector<96x168xbf16>, vector<28x168xf32> -> vector<28x168xf32>
    %21 = arith.addf %16, %20 : vector<28x168xf32>
    %22 = vector.extract_strided_slice %2 {offsets = [4, 0], sizes = [28, 96], strides = [1, 1]} : vector<32x96xbf16> to vector<28x96xbf16>
    %c4 = arith.constant 4 : index
    %c0_14 = arith.constant 0 : index
    %c0_15 = arith.constant 0 : index
    %23 = vector.load %arg2[%c4, %c0_14, %c0_15] : memref<5x96x168xbf16, #tpu.memory_space<vmem>>, vector<1x96x168xbf16>
    %24 = vector.shape_cast %23 : vector<1x96x168xbf16> to vector<96x168xbf16>
    %cst_16 = arith.constant dense<0.000000e+00> : vector<28x168xf32>
    %25 = tpu.matmul %22, %24, %cst_16 {dimension_numbers = #tpu.dot_dimension_numbers<[1], [0], [0], [1], [0, 0, 1, 1], [], []>} : vector<28x96xbf16>, vector<96x168xbf16>, vector<28x168xf32> -> vector<28x168xf32>
    %26 = arith.addf %21, %25 : vector<28x168xf32>
    %c0_17 = arith.constant 0 : index
    %c0_18 = arith.constant 0 : index
    %27 = vector.load %arg3[%c0_17, %c0_18] : memref<1x168xf32, #tpu.memory_space<vmem>>, vector<1x168xf32>
    %28 = vector.broadcast %27 : vector<1x168xf32> to vector<28x168xf32>
    %29 = arith.addf %26, %28 : vector<28x168xf32>
    %cst_19 = arith.constant 0.000000e+00 : f32
    %30 = vector.broadcast %cst_19 : f32 to vector<28x168xf32>
    %31 = arith.maximumf %29, %30 : vector<28x168xf32>
    %c0_20 = arith.constant 0 : index
    %c0_21 = arith.constant 0 : index
    %32 = vector.load %arg4[%c0_20, %c0_21] : memref<168x168xf32, #tpu.memory_space<vmem>>, vector<168x168xf32>
    %cst_22 = arith.constant dense<0.000000e+00> : vector<28x168xf32>
    %33 = tpu.matmul %31, %32, %cst_22 {dimension_numbers = #tpu.dot_dimension_numbers<[1], [0], [0], [1], [0, 0, 1, 1], [], []>} : vector<28x168xf32>, vector<168x168xf32>, vector<28x168xf32> -> vector<28x168xf32>
    %34 = arith.maximumf %31, %33 : vector<28x168xf32>
    %c0_23 = arith.constant 0 : index
    %c0_24 = arith.constant 0 : index
    %35 = vector.load %arg5[%c0_23, %c0_24] : memref<28x28xf32, #tpu.memory_space<vmem>>, vector<28x28xf32>
    %cst_25 = arith.constant dense<0.000000e+00> : vector<28x168xf32>
    %36 = tpu.matmul %35, %34, %cst_25 {dimension_numbers = #tpu.dot_dimension_numbers<[1], [0], [0], [1], [0, 0, 1, 1], [], []>} : vector<28x28xf32>, vector<28x168xf32>, vector<28x168xf32> -> vector<28x168xf32>
    %37 = arith.maximumf %34, %36 : vector<28x168xf32>
    %38 = arith.truncf %37 : vector<28x168xf32> to vector<28x168xbf16>
    %39 = vector.extract_strided_slice %38 {offsets = [0, 0], sizes = [20, 168], strides = [1, 1]} : vector<28x168xbf16> to vector<20x168xbf16>
    %c0_26 = arith.constant 0 : index
    %c0_27 = arith.constant 0 : index
    %c0_28 = arith.constant 0 : index
    %40 = vector.load %arg6[%c0_26, %c0_27, %c0_28] : memref<5x168x160xbf16, #tpu.memory_space<vmem>>, vector<1x168x160xbf16>
    %41 = vector.shape_cast %40 : vector<1x168x160xbf16> to vector<168x160xbf16>
    %cst_29 = arith.constant dense<0.000000e+00> : vector<20x160xf32>
    %42 = tpu.matmul %39, %41, %cst_29 {dimension_numbers = #tpu.dot_dimension_numbers<[1], [0], [0], [1], [0, 0, 1, 1], [], []>} : vector<20x168xbf16>, vector<168x160xbf16>, vector<20x160xf32> -> vector<20x160xf32>
    %43 = vector.extract_strided_slice %38 {offsets = [2, 0], sizes = [20, 168], strides = [1, 1]} : vector<28x168xbf16> to vector<20x168xbf16>
    %c1_30 = arith.constant 1 : index
    %c0_31 = arith.constant 0 : index
    %c0_32 = arith.constant 0 : index
    %44 = vector.load %arg6[%c1_30, %c0_31, %c0_32] : memref<5x168x160xbf16, #tpu.memory_space<vmem>>, vector<1x168x160xbf16>
    %45 = vector.shape_cast %44 : vector<1x168x160xbf16> to vector<168x160xbf16>
    %cst_33 = arith.constant dense<0.000000e+00> : vector<20x160xf32>
    %46 = tpu.matmul %43, %45, %cst_33 {dimension_numbers = #tpu.dot_dimension_numbers<[1], [0], [0], [1], [0, 0, 1, 1], [], []>} : vector<20x168xbf16>, vector<168x160xbf16>, vector<20x160xf32> -> vector<20x160xf32>
    %47 = arith.addf %42, %46 : vector<20x160xf32>
    %48 = vector.extract_strided_slice %38 {offsets = [4, 0], sizes = [20, 168], strides = [1, 1]} : vector<28x168xbf16> to vector<20x168xbf16>
    %c2_34 = arith.constant 2 : index
    %c0_35 = arith.constant 0 : index
    %c0_36 = arith.constant 0 : index
    %49 = vector.load %arg6[%c2_34, %c0_35, %c0_36] : memref<5x168x160xbf16, #tpu.memory_space<vmem>>, vector<1x168x160xbf16>
    %50 = vector.shape_cast %49 : vector<1x168x160xbf16> to vector<168x160xbf16>
    %cst_37 = arith.constant dense<0.000000e+00> : vector<20x160xf32>
    %51 = tpu.matmul %48, %50, %cst_37 {dimension_numbers = #tpu.dot_dimension_numbers<[1], [0], [0], [1], [0, 0, 1, 1], [], []>} : vector<20x168xbf16>, vector<168x160xbf16>, vector<20x160xf32> -> vector<20x160xf32>
    %52 = arith.addf %47, %51 : vector<20x160xf32>
    %53 = vector.extract_strided_slice %38 {offsets = [6, 0], sizes = [20, 168], strides = [1, 1]} : vector<28x168xbf16> to vector<20x168xbf16>
    %c3_38 = arith.constant 3 : index
    %c0_39 = arith.constant 0 : index
    %c0_40 = arith.constant 0 : index
    %54 = vector.load %arg6[%c3_38, %c0_39, %c0_40] : memref<5x168x160xbf16, #tpu.memory_space<vmem>>, vector<1x168x160xbf16>
    %55 = vector.shape_cast %54 : vector<1x168x160xbf16> to vector<168x160xbf16>
    %cst_41 = arith.constant dense<0.000000e+00> : vector<20x160xf32>
    %56 = tpu.matmul %53, %55, %cst_41 {dimension_numbers = #tpu.dot_dimension_numbers<[1], [0], [0], [1], [0, 0, 1, 1], [], []>} : vector<20x168xbf16>, vector<168x160xbf16>, vector<20x160xf32> -> vector<20x160xf32>
    %57 = arith.addf %52, %56 : vector<20x160xf32>
    %58 = vector.extract_strided_slice %38 {offsets = [8, 0], sizes = [20, 168], strides = [1, 1]} : vector<28x168xbf16> to vector<20x168xbf16>
    %c4_42 = arith.constant 4 : index
    %c0_43 = arith.constant 0 : index
    %c0_44 = arith.constant 0 : index
    %59 = vector.load %arg6[%c4_42, %c0_43, %c0_44] : memref<5x168x160xbf16, #tpu.memory_space<vmem>>, vector<1x168x160xbf16>
    %60 = vector.shape_cast %59 : vector<1x168x160xbf16> to vector<168x160xbf16>
    %cst_45 = arith.constant dense<0.000000e+00> : vector<20x160xf32>
    %61 = tpu.matmul %58, %60, %cst_45 {dimension_numbers = #tpu.dot_dimension_numbers<[1], [0], [0], [1], [0, 0, 1, 1], [], []>} : vector<20x168xbf16>, vector<168x160xbf16>, vector<20x160xf32> -> vector<20x160xf32>
    %62 = arith.addf %57, %61 : vector<20x160xf32>
    %c0_46 = arith.constant 0 : index
    %c0_47 = arith.constant 0 : index
    %63 = vector.load %arg7[%c0_46, %c0_47] : memref<1x160xf32, #tpu.memory_space<vmem>>, vector<1x160xf32>
    %64 = vector.broadcast %63 : vector<1x160xf32> to vector<20x160xf32>
    %65 = arith.addf %62, %64 : vector<20x160xf32>
    %cst_48 = arith.constant 0.000000e+00 : f32
    %66 = vector.broadcast %cst_48 : f32 to vector<20x160xf32>
    %67 = arith.maximumf %65, %66 : vector<20x160xf32>
    %c0_49 = arith.constant 0 : index
    %c0_50 = arith.constant 0 : index
    %68 = vector.load %arg8[%c0_49, %c0_50] : memref<160x160xf32, #tpu.memory_space<vmem>>, vector<160x160xf32>
    %cst_51 = arith.constant dense<0.000000e+00> : vector<20x160xf32>
    %69 = tpu.matmul %67, %68, %cst_51 {dimension_numbers = #tpu.dot_dimension_numbers<[1], [0], [0], [1], [0, 0, 1, 1], [], []>} : vector<20x160xf32>, vector<160x160xf32>, vector<20x160xf32> -> vector<20x160xf32>
    %70 = arith.maximumf %67, %69 : vector<20x160xf32>
    %c0_52 = arith.constant 0 : index
    %c0_53 = arith.constant 0 : index
    %71 = vector.load %arg9[%c0_52, %c0_53] : memref<20x20xf32, #tpu.memory_space<vmem>>, vector<20x20xf32>
    %cst_54 = arith.constant dense<0.000000e+00> : vector<20x160xf32>
    %72 = tpu.matmul %71, %70, %cst_54 {dimension_numbers = #tpu.dot_dimension_numbers<[1], [0], [0], [1], [0, 0, 1, 1], [], []>} : vector<20x20xf32>, vector<20x160xf32>, vector<20x160xf32> -> vector<20x160xf32>
    %73 = arith.maximumf %70, %72 : vector<20x160xf32>
    %74 = arith.truncf %73 : vector<20x160xf32> to vector<20x160xbf16>
    %75 = vector.extract_strided_slice %74 {offsets = [0, 0], sizes = [1, 160], strides = [1, 1]} : vector<20x160xbf16> to vector<1x160xbf16>
    %c0_55 = arith.constant 0 : index
    %c0_56 = arith.constant 0 : index
    %c0_57 = arith.constant 0 : index
    %76 = vector.load %arg10[%c0_55, %c0_56, %c0_57] : memref<5x160x120xbf16, #tpu.memory_space<vmem>>, vector<1x160x120xbf16>
    %77 = vector.shape_cast %76 : vector<1x160x120xbf16> to vector<160x120xbf16>
    %cst_58 = arith.constant dense<0.000000e+00> : vector<1x120xf32>
    %78 = tpu.matmul %75, %77, %cst_58 {dimension_numbers = #tpu.dot_dimension_numbers<[1], [0], [0], [1], [0, 0, 1, 1], [], []>} : vector<1x160xbf16>, vector<160x120xbf16>, vector<1x120xf32> -> vector<1x120xf32>
    %79 = vector.extract_strided_slice %74 {offsets = [4, 0], sizes = [1, 160], strides = [1, 1]} : vector<20x160xbf16> to vector<1x160xbf16>
    %c1_59 = arith.constant 1 : index
    %c0_60 = arith.constant 0 : index
    %c0_61 = arith.constant 0 : index
    %80 = vector.load %arg10[%c1_59, %c0_60, %c0_61] : memref<5x160x120xbf16, #tpu.memory_space<vmem>>, vector<1x160x120xbf16>
    %81 = vector.shape_cast %80 : vector<1x160x120xbf16> to vector<160x120xbf16>
    %cst_62 = arith.constant dense<0.000000e+00> : vector<1x120xf32>
    %82 = tpu.matmul %79, %81, %cst_62 {dimension_numbers = #tpu.dot_dimension_numbers<[1], [0], [0], [1], [0, 0, 1, 1], [], []>} : vector<1x160xbf16>, vector<160x120xbf16>, vector<1x120xf32> -> vector<1x120xf32>
    %83 = arith.addf %78, %82 : vector<1x120xf32>
    %84 = vector.extract_strided_slice %74 {offsets = [8, 0], sizes = [1, 160], strides = [1, 1]} : vector<20x160xbf16> to vector<1x160xbf16>
    %c2_63 = arith.constant 2 : index
    %c0_64 = arith.constant 0 : index
    %c0_65 = arith.constant 0 : index
    %85 = vector.load %arg10[%c2_63, %c0_64, %c0_65] : memref<5x160x120xbf16, #tpu.memory_space<vmem>>, vector<1x160x120xbf16>
    %86 = vector.shape_cast %85 : vector<1x160x120xbf16> to vector<160x120xbf16>
    %cst_66 = arith.constant dense<0.000000e+00> : vector<1x120xf32>
    %87 = tpu.matmul %84, %86, %cst_66 {dimension_numbers = #tpu.dot_dimension_numbers<[1], [0], [0], [1], [0, 0, 1, 1], [], []>} : vector<1x160xbf16>, vector<160x120xbf16>, vector<1x120xf32> -> vector<1x120xf32>
    %88 = arith.addf %83, %87 : vector<1x120xf32>
    %89 = vector.extract_strided_slice %74 {offsets = [12, 0], sizes = [1, 160], strides = [1, 1]} : vector<20x160xbf16> to vector<1x160xbf16>
    %c3_67 = arith.constant 3 : index
    %c0_68 = arith.constant 0 : index
    %c0_69 = arith.constant 0 : index
    %90 = vector.load %arg10[%c3_67, %c0_68, %c0_69] : memref<5x160x120xbf16, #tpu.memory_space<vmem>>, vector<1x160x120xbf16>
    %91 = vector.shape_cast %90 : vector<1x160x120xbf16> to vector<160x120xbf16>
    %cst_70 = arith.constant dense<0.000000e+00> : vector<1x120xf32>
    %92 = tpu.matmul %89, %91, %cst_70 {dimension_numbers = #tpu.dot_dimension_numbers<[1], [0], [0], [1], [0, 0, 1, 1], [], []>} : vector<1x160xbf16>, vector<160x120xbf16>, vector<1x120xf32> -> vector<1x120xf32>
    %93 = arith.addf %88, %92 : vector<1x120xf32>
    %94 = vector.extract_strided_slice %74 {offsets = [16, 0], sizes = [1, 160], strides = [1, 1]} : vector<20x160xbf16> to vector<1x160xbf16>
    %c4_71 = arith.constant 4 : index
    %c0_72 = arith.constant 0 : index
    %c0_73 = arith.constant 0 : index
    %95 = vector.load %arg10[%c4_71, %c0_72, %c0_73] : memref<5x160x120xbf16, #tpu.memory_space<vmem>>, vector<1x160x120xbf16>
    %96 = vector.shape_cast %95 : vector<1x160x120xbf16> to vector<160x120xbf16>
    %cst_74 = arith.constant dense<0.000000e+00> : vector<1x120xf32>
    %97 = tpu.matmul %94, %96, %cst_74 {dimension_numbers = #tpu.dot_dimension_numbers<[1], [0], [0], [1], [0, 0, 1, 1], [], []>} : vector<1x160xbf16>, vector<160x120xbf16>, vector<1x120xf32> -> vector<1x120xf32>
    %98 = arith.addf %93, %97 : vector<1x120xf32>
    %c0_75 = arith.constant 0 : index
    %c0_76 = arith.constant 0 : index
    %99 = vector.load %arg11[%c0_75, %c0_76] : memref<1x120xf32, #tpu.memory_space<vmem>>, vector<1x120xf32>
    %100 = arith.addf %98, %99 : vector<1x120xf32>
    %cst_77 = arith.constant 0.000000e+00 : f32
    %101 = vector.broadcast %cst_77 : f32 to vector<1x120xf32>
    %102 = arith.maximumf %100, %101 : vector<1x120xf32>
    %103 = arith.truncf %102 : vector<1x120xf32> to vector<1x120xbf16>
    %c0_78 = arith.constant 0 : index
    %c0_79 = arith.constant 0 : index
    %104 = vector.load %arg12[%c0_78, %c0_79] : memref<120x84xbf16, #tpu.memory_space<vmem>>, vector<120x84xbf16>
    %cst_80 = arith.constant dense<0.000000e+00> : vector<1x84xf32>
    %105 = tpu.matmul %103, %104, %cst_80 {dimension_numbers = #tpu.dot_dimension_numbers<[1], [0], [0], [1], [0, 0, 1, 1], [], []>} : vector<1x120xbf16>, vector<120x84xbf16>, vector<1x84xf32> -> vector<1x84xf32>
    %c0_81 = arith.constant 0 : index
    %c0_82 = arith.constant 0 : index
    %106 = vector.load %arg13[%c0_81, %c0_82] : memref<1x84xf32, #tpu.memory_space<vmem>>, vector<1x84xf32>
    %107 = arith.addf %105, %106 : vector<1x84xf32>
    %cst_83 = arith.constant 0.000000e+00 : f32
    %108 = vector.broadcast %cst_83 : f32 to vector<1x84xf32>
    %109 = arith.maximumf %107, %108 : vector<1x84xf32>
    %110 = arith.truncf %109 : vector<1x84xf32> to vector<1x84xbf16>
    %c0_84 = arith.constant 0 : index
    %c0_85 = arith.constant 0 : index
    %111 = vector.load %arg14[%c0_84, %c0_85] : memref<84x10xbf16, #tpu.memory_space<vmem>>, vector<84x10xbf16>
    %cst_86 = arith.constant dense<0.000000e+00> : vector<1x10xf32>
    %112 = tpu.matmul %110, %111, %cst_86 {dimension_numbers = #tpu.dot_dimension_numbers<[1], [0], [0], [1], [0, 0, 1, 1], [], []>} : vector<1x84xbf16>, vector<84x10xbf16>, vector<1x10xf32> -> vector<1x10xf32>
    %c0_87 = arith.constant 0 : index
    %c0_88 = arith.constant 0 : index
    %113 = vector.load %arg15[%c0_87, %c0_88] : memref<1x10xf32, #tpu.memory_space<vmem>>, vector<1x10xf32>
    %114 = arith.addf %112, %113 : vector<1x10xf32>
    %c0_89 = arith.constant 0 : index
    %c0_90 = arith.constant 0 : index
    %c0_91 = arith.constant 0 : index
    %115 = vector.load %arg16[%c0_89, %c0_90, %c0_91] : memref<1x1x10xf32, #tpu.memory_space<vmem>>, vector<1x1x10xf32>
    %116 = vector.shape_cast %115 : vector<1x1x10xf32> to vector<1x10xf32>
    %117 = vector.shape_cast %114 : vector<1x10xf32> to vector<1x1x10xf32>
    tpu.vector_store %arg16[%c0_89, %c0_90, %c0_91], %117 {strides = array<i32>} : memref<1x1x10xf32, #tpu.memory_space<vmem>>, vector<1x1x10xf32>,
    return
  }
  func.func @transform_0(%arg0: i32) -> (i32, i32, i32) {
    %c0_i32 = arith.constant 0 : i32
    %c0_i32_0 = arith.constant 0 : i32
    %c0_i32_1 = arith.constant 0 : i32
    return %arg0, %c0_i32, %c0_i32_0 : i32, i32, i32
  }
  func.func @transform_1(%arg0: i32) -> (i32, i32, i32) {
    %c0_i32 = arith.constant 0 : i32
    %c0_i32_0 = arith.constant 0 : i32
    %c0_i32_1 = arith.constant 0 : i32
    %c0_i32_2 = arith.constant 0 : i32
    return %c0_i32, %c0_i32_0, %c0_i32_1 : i32, i32, i32
  }
  func.func @transform_2(%arg0: i32) -> (i32, i32) {
    %c0_i32 = arith.constant 0 : i32
    %c0_i32_0 = arith.constant 0 : i32
    %c0_i32_1 = arith.constant 0 : i32
    return %c0_i32, %c0_i32_0 : i32, i32
  }
  func.func @transform_3(%arg0: i32) -> (i32, i32) {
    %c0_i32 = arith.constant 0 : i32
    %c0_i32_0 = arith.constant 0 : i32
    %c0_i32_1 = arith.constant 0 : i32
    return %c0_i32, %c0_i32_0 : i32, i32
  }
  func.func @transform_4(%arg0: i32) -> (i32, i32) {
    %c0_i32 = arith.constant 0 : i32
    %c0_i32_0 = arith.constant 0 : i32
    %c0_i32_1 = arith.constant 0 : i32
    return %c0_i32, %c0_i32_0 : i32, i32
  }
  func.func @transform_5(%arg0: i32) -> (i32, i32, i32) {
    %c0_i32 = arith.constant 0 : i32
    %c0_i32_0 = arith.constant 0 : i32
    %c0_i32_1 = arith.constant 0 : i32
    %c0_i32_2 = arith.constant 0 : i32
    return %c0_i32, %c0_i32_0, %c0_i32_1 : i32, i32, i32
  }
  func.func @transform_6(%arg0: i32) -> (i32, i32) {
    %c0_i32 = arith.constant 0 : i32
    %c0_i32_0 = arith.constant 0 : i32
    %c0_i32_1 = arith.constant 0 : i32
    return %c0_i32, %c0_i32_0 : i32, i32
  }
  func.func @transform_7(%arg0: i32) -> (i32, i32) {
    %c0_i32 = arith.constant 0 : i32
    %c0_i32_0 = arith.constant 0 : i32
    %c0_i32_1 = arith.constant 0 : i32
    return %c0_i32, %c0_i32_0 : i32, i32
  }
  func.func @transform_8(%arg0: i32) -> (i32, i32) {
    %c0_i32 = arith.constant 0 : i32
    %c0_i32_0 = arith.constant 0 : i32
    %c0_i32_1 = arith.constant 0 : i32
    return %c0_i32, %c0_i32_0 : i32, i32
  }
  func.func @transform_9(%arg0: i32) -> (i32, i32, i32) {
    %c0_i32 = arith.constant 0 : i32
    %c0_i32_0 = arith.constant 0 : i32
    %c0_i32_1 = arith.constant 0 : i32
    %c0_i32_2 = arith.constant 0 : i32
    return %c0_i32, %c0_i32_0, %c0_i32_1 : i32, i32, i32
  }
  func.func @transform_10(%arg0: i32) -> (i32, i32) {
    %c0_i32 = arith.constant 0 : i32
    %c0_i32_0 = arith.constant 0 : i32
    %c0_i32_1 = arith.constant 0 : i32
    return %c0_i32, %c0_i32_0 : i32, i32
  }
  func.func @transform_11(%arg0: i32) -> (i32, i32) {
    %c0_i32 = arith.constant 0 : i32
    %c0_i32_0 = arith.constant 0 : i32
    %c0_i32_1 = arith.constant 0 : i32
    return %c0_i32, %c0_i32_0 : i32, i32
  }
  func.func @transform_12(%arg0: i32) -> (i32, i32) {
    %c0_i32 = arith.constant 0 : i32
    %c0_i32_0 = arith.constant 0 : i32
    %c0_i32_1 = arith.constant 0 : i32
    return %c0_i32, %c0_i32_0 : i32, i32
  }
  func.func @transform_13(%arg0: i32) -> (i32, i32) {
    %c0_i32 = arith.constant 0 : i32
    %c0_i32_0 = arith.constant 0 : i32
    %c0_i32_1 = arith.constant 0 : i32
    return %c0_i32, %c0_i32_0 : i32, i32
  }
  func.func @transform_14(%arg0: i32) -> (i32, i32) {
    %c0_i32 = arith.constant 0 : i32
    %c0_i32_0 = arith.constant 0 : i32
    %c0_i32_1 = arith.constant 0 : i32
    return %c0_i32, %c0_i32_0 : i32, i32
  }
  func.func @transform_15(%arg0: i32) -> (i32, i32, i32) {
    %c0_i32 = arith.constant 0 : i32
    %c0_i32_0 = arith.constant 0 : i32
    %c0_i32_1 = arith.constant 0 : i32
    return %arg0, %c0_i32, %c0_i32_0 : i32, i32, i32
  }
}

</mosaic_0001>

<bundles_post_ra>
// kernel: convnet_forward.1
= control target key start
LH: loop header
LB: loop body
LE: loop exit
PB: predicated region body
PF: predicated region fallthrough
CT: control target
= control target key end

     0   :  { %s6308_s0 = inlined_call_operand.vmem [shape: f32[2,32,96], index: 0, kind: input, shape index: {}]   ;;  %s6309_s1 = inlined_call_operand.vmem [shape: bf16[5,96,168], index: 1, kind: input, shape index: {}]   ;;  %s6310_s2 = inlined_call_operand.vmem [shape: f32[1,168], index: 2, kind: input, shape index: {}]   ;;  %s6311_s3 = inlined_call_operand.vmem [shape: f32[168,168], index: 3, kind: input, shape index: {}]   ;;  %s6312_s4 = inlined_call_operand.vmem [shape: f32[28,28], index: 4, kind: input, shape index: {}]   ;;  %s6313_s5 = inlined_call_operand.vmem [shape: bf16[5,168,160], index: 5, kind: input, shape index: {}]   ;;  %s6314_s6 = inlined_call_operand.vmem [shape: f32[1,160], index: 6, kind: input, shape index: {}]   ;;  %s6315_s7 = inlined_call_operand.vmem [shape: f32[160,160], index: 7, kind: input, shape index: {}]   ;;  %s6316_s8 = inlined_call_operand.vmem [shape: f32[20,20], index: 8, kind: input, shape index: {}]   ;;  %s6317_s9 = inlined_call_operand.vmem [shape: bf16[5,160,120], index: 9, kind: input, shape index: {}]   ;;  %s6318_s10 = inlined_call_operand.vmem [shape: f32[1,120], index: 10, kind: input, shape index: {}]   ;;  %s6319_s11 = inlined_call_operand.vmem [shape: bf16[120,84], index: 11, kind: input, shape index: {}]   ;;  %s6320_s12 = inlined_call_operand.vmem [shape: f32[1,84], index: 12, kind: input, shape index: {}]   ;;  %s6321_s13 = inlined_call_operand.vmem [shape: bf16[84,10], index: 13, kind: input, shape index: {}]   ;;  %s6322_s14 = inlined_call_operand.vmem [shape: f32[1,10], index: 14, kind: input, shape index: {}]   ;;  %s6323_s15 = inlined_call_operand.hbm [shape: f32[2,1,10], index: 15, kind: output, shape index: {}]  }
   0x1   :  { %6331 = sst [smem:[#allocation11_spill]] %s6323_s15 }
   0x2   :  { %20 = vsyncpa [#allocation3], 0 }
   0x3   :  { %22 = vsyncpa [#allocation3 + $0x1], 0  ;;  %s4916_s18 = smov 0   ;;  %s4918_s19 = smov 0  }
   0x4   :  { %s4920_s20 = smov 0   ;;  %s4922_s21 = smov 0  }
   0x5 LB: > { %6332 = sst [smem:[#allocation5_spill]] %s4817_s18  ;;  %s4937_s22 = sadd.s32 4294967295, %s4829_s21   ;;  %s4829_s21 = sphi %s4922_s21, %s6344_s21   ;;  %s4825_s20 = sphi %s4920_s20, %s6346_s20   ;;  %s4821_s19 = sphi %s4918_s19, %s6348_s19   ;;  %s4817_s18 = sphi %s4916_s18, %s6347_s18  }
   0x6   : > { %6333 = sst [smem:[#allocation6_spill]] %s4825_s20  ;;  %s3710_s23 = sadd.s32 4294967294, %s4829_s21  }
   0x7   : > { %6334 = sst [smem:[#allocation7_spill]] %s4829_s21  ;;  %s4941_s24 = sadd.s32 1, %s4829_s21  }
   0x8   : > { %6335 = sst [smem:[#allocation8_spill]] %s4941_s24  ;;  %s355_s25 = sadd.s32 1, %s4825_s20 }
   0x9   : > { %s352_s26 = ssub.s32 %s4829_s21, %s4941_s24  ;;  %p365_p0 = scmp.ne.s32.totalorder %s4825_s20, %s4821_s19 }
   0xa   : > { %p353_p1 = scmp.eq.s32.totalorder %s352_s26, 0  ;;  %p366_p2 = scmp.eq.s32.totalorder %s4937_s22, 1 }
   0xb   : > { %p371_p3 = scmp.ne.s32.totalorder %s4821_s19, %s4817_s18  ;;  %p372_p4 = scmp.eq.s32.totalorder %s3710_s23, 1 }
   0xc   : > { %s4952_s27 = scalar_select %p353_p1, %s4825_s20, %s355_s25  }
   0xd   : > { %p4954_p5 = por %p366_p2, %p365_p0  ;;  %p4958_p6 = por %p372_p4, %p371_p3 }
   0xe   : > { %6336 = sst [smem:[#allocation9_spill]] %s4952_s27  ;;  %p3713_p7 = scmp.ge.s32.totalorder %s4829_s21, 1 }
   0xf   : > { %s6338_s29 = scalar_select %p4958_p6, 1, 0 }
  0x10   : > { %p440_p8 = scmp.lt.s32.totalorder %s4829_s21, 3 }
  0x11   : > { %6339 = sst [smem:[#allocation10_spill]] %s6338_s29 }
  0x12   : > { %p441_p9 = pnand %p3713_p7, %p440_p8 }
  0x13   : > { %v4453_v0 = vld [vmem:[%s6309_s1 + $0x64] ss:$8 sps:$4 sm:$0xff] (!%p441_p9)   ;;  %p487_p10 = scmp.lt.s32.totalorder (!%p441_p9), %s4937_s22, 1  ;;  %v4455_v1 = vld [vmem:[%s6309_s1 + $0x60] ss:$8 sps:$4 sm:$0xff] (!%p441_p9)   ;;  %v4831_v2 = vmov (!%p441_p9), 0  }
  0x14   : > { %444 = sbr.rel (%p441_p9) target bundleno = 2455 (0x997), region = 80  ;;  %639 = vmatprep.mubr.bf16.mxu0 (!%p441_p9), %v4831_v2  ;;  %607 = vmatprep.subr.bf16.mxu0 (!%p441_p9), %v4453_v0  ;;  %v4456_v3 = vld [vmem:[%s6309_s1 + $0x74] ss:$8 sps:$4 sm:$0xff] (!%p441_p9)   ;;  %v4458_v4 = vld [vmem:[%s6309_s1 + $0x70] ss:$8 sps:$4 sm:$0xff] (!%p441_p9)   ;;  %vm1084_vm1 = vcmask (!%p441_p9), 1045504  }
  0x15   : > { %608 = vmatpush1.bf16.msra.mxu0 (!%p441_p9), %v4455_v1  ;;  %v4459_v5 = vld [vmem:[%s6309_s1 + $0x84] ss:$8 sps:$4 sm:$0xff] (!%p441_p9)   ;;  %v4461_v6 = vld [vmem:[%s6309_s1 + $0x80] ss:$8 sps:$4 sm:$0xff] (!%p441_p9)   ;;  %v4462_v7 = vld [vmem:[%s6309_s1 + $0x94] ss:$8 sps:$4 sm:$0xff] (!%p441_p9)  }
  0x16   : > { %609 = vmatprep.subr.bf16.mxu0 (!%p441_p9), %v4456_v3  ;;  %v4464_v13 = vld [vmem:[%s6309_s1 + $0x90] ss:$8 sps:$4 sm:$0xff] (!%p441_p9)   ;;  %v4465_v15 = vld [vmem:[%s6309_s1 + $0xa4] ss:$8 sps:$4 sm:$0xff] (!%p441_p9)   ;;  %v4467_v22 = vld [vmem:[%s6309_s1 + $0xa0] ss:$8 sps:$4 sm:$0xff] (!%p441_p9)  }
  0x17   : > { %v4468_v26 = vld [vmem:[%s6309_s1 + $0xb4] ss:$8 sps:$4 sm:$0xff] (!%p441_p9)   ;;  %vm936_vm0 = vsmask.f32 (!%p441_p9), 6400  ;;  %v4470_v31 = vld [vmem:[%s6309_s1 + $0xb0] ss:$8 sps:$4 sm:$0xff] (!%p441_p9)  }
  0x18   : > { %v4473_v35 = vld [vmem:[%s6309_s1 + $0x4] ss:$8 sps:$4 sm:$0xff] (!%p441_p9)   ;;  %vm524_vm2 = vsmask.f32 (!%p441_p9), 7424  ;;  %v4471_v37 = vld [vmem:[%s6309_s1] ss:$8 sps:$4 sm:$0xff] (!%p441_p9)  }
  0x19   : > { %610 = vmatpush1.bf16.msra.mxu0 (!%p441_p9), %v4458_v4  ;;  %vm600_vm3 = vcmask (!%p441_p9), 785408   ;;  %v4476_v39 = vld [vmem:[%s6309_s1 + $0x14] ss:$8 sps:$4 sm:$0xff] (!%p441_p9)   ;;  %v4474_v40 = vld [vmem:[%s6309_s1 + $0x10] ss:$8 sps:$4 sm:$0xff] (!%p441_p9)   ;;  %v1244_v50 = vld [vmem:[%s6311_s3 + $0x8] sm:$0xff] (!%p441_p9) }
  0x1a   : > { %611 = vmatprep.subr.bf16.mxu0 (!%p441_p9), %v4459_v5  ;;  %v4479_v41 = vld [vmem:[%s6309_s1 + $0x24] ss:$8 sps:$4 sm:$0xff] (!%p441_p9)   ;;  %v4477_v43 = vld [vmem:[%s6309_s1 + $0x20] ss:$8 sps:$4 sm:$0xff] (!%p441_p9)   ;;  %v4482_v44 = vld [vmem:[%s6309_s1 + $0x34] ss:$8 sps:$4 sm:$0xff] (!%p441_p9)  }
  0x1b   : > { %s488_s27 = scalar_select %p487_p10, %s4937_s22, 1  ;;  %v4480_v45 = vld [vmem:[%s6309_s1 + $0x30] ss:$8 sps:$4 sm:$0xff]   ;;  %v4485_v46 = vld [vmem:[%s6309_s1 + $0x44] ss:$8 sps:$4 sm:$0xff]   ;;  %vm792_vm4 = vcmask 1046528  }
  0x1c   : > { %v4483_v47 = vld [vmem:[%s6309_s1 + $0x40] ss:$8 sps:$4 sm:$0xff]   ;;  %v4488_v48 = vld [vmem:[%s6309_s1 + $0x54] ss:$8 sps:$4 sm:$0xff]   ;;  %v4486_v49 = vld [vmem:[%s6309_s1 + $0x50] ss:$8 sps:$4 sm:$0xff]  }
  0x1d   : > { %s4215_s17 = sshll.u32 %s488_s27, 5  ;;  %612 = vmatpush1.bf16.msra.mxu0 %v4461_v6  ;;  %v1246_v51 = vld [vmem:[%s6311_s3 + $0x18] sm:$0xff]  ;;  %v1243_v52 = vld [vmem:[%s6311_s3] sm:$0xff]  ;;  %v1245_v54 = vld [vmem:[%s6311_s3 + $0x10] sm:$0xff]  ;;  %vm1285_vm5 = vcmask 326656   ;;  %vm1412_vm6 = vcmask 1043456  }
  0x1e   : > { %s491_s18 = scalar_lea.vmem %s6308_s0, %s4215_s17  ;;  %613 = vmatprep.subr.bf16.mxu0 %v4462_v7  ;;  %v4268_v53 = vpack.c.bf16 %v1246_v51, %v1244_v50  ;;  %v1248_v55 = vld [vmem:[%s6311_s3 + $0x28] sm:$0xff]  ;;  %v1250_v56 = vld [vmem:[%s6311_s3 + $0x38] sm:$0xff]  ;;  %v4270_v58 = vpack.c.bf16 %v1245_v54, %v1243_v52  ;;  %v1247_v60 = vld [vmem:[%s6311_s3 + $0x20] sm:$0xff]  ;;  %vm4833_vm7 = vmmov 1   ;;  %vm1399_vm9 = vcmask 228352   ;;  %s485_s29 = sand.u32 1, %s4821_s19  }
  0x1f   : > { %v493_v8 = vld [vmem:[%s491_s18] sm:$0xff]  ;;  %v494_v9 = vld [vmem:[%s491_s18 + $0x8] sm:$0xff]  ;;  %v495_v10 = vld [vmem:[%s491_s18 + $0x10] sm:$0xff]  ;;  %v4272_v59 = vpack.c.bf16 %v1250_v56, %v1248_v55  ;;  %vm2137_vm10 = vcmask 1044480   ;;  %vm2589_vm11 = vcmask 261120   ;;  %vm2691_vm12 = vcmask 162816  }
  0x20   : > { %v496_v11 = vld [vmem:[%s491_s18 + $0x18] sm:$0xff]  ;;  %v4991_v12 = vpack.c.bf16 %v494_v9, %v493_v8  ;;  %v4491_v57 = vld [vmem:[%s6309_s1 + $0xc4] ss:$8 sps:$4 sm:$0xff]   ;;  %v1249_v61 = vld [vmem:[%s6311_s3 + $0x30] sm:$0xff]  ;;  %4269 = vmatprep.subr.bf16.mxu1 %v4268_v53  ;;  %vm4834_vm13 = vmmov 0   ;;  %vm3498_vm14 = vcmask 982016  }
  0x21   : > { %v4996_v14 = vpack.c.bf16 %v496_v11, %v495_v10  ;;  %614 = vmatpush1.bf16.msra.mxu0 %v4464_v13  ;;  %v1252_v62 = vld [vmem:[%s6311_s3 + $0x48] sm:$0xff]  ;;  %v1254_v63 = vld [vmem:[%s6311_s3 + $0x58] sm:$0xff]  ;;  %4271 = vmatpush1.bf16.msra.mxu1 %v4270_v58  ;;  %v4274_v0 = vpack.c.bf16 %v1249_v61, %v1247_v60  ;;  %v1251_v3 = vld [vmem:[%s6311_s3 + $0x40] sm:$0xff]  ;;  %vm3596_vm15 = vcmask 1041408   ;;  %s4212_s17 = sshll.u32 %s4937_s22, 4  ;;  %s486_s23 = scalar_lea.vmem [#allocation2], %s485_s29 }
  0x22   : > { %v526_v16 = vshrl.u32 %v4991_v12, 16  ;;  %v528_v17 = vshll.u32 %v4991_v12, 16  ;;  %615 = vmatprep.subr.bf16.mxu0 %v4465_v15  ;;  %v1085_v29 = vrot.slane %v4991_v12, 2  ;;  %v4489_v1 = vld [vmem:[%s6309_s1 + $0xc0] ss:$8 sps:$4 sm:$0xff]   ;;  %4273 = vmatprep.subr.bf16.mxu1 %v4272_v59  ;;  %v1253_v4 = vld [vmem:[%s6311_s3 + $0x50] sm:$0xff]  ;;  %v4276_v6 = vpack.c.bf16 %v1254_v63, %v1252_v62  ;;  %vm4313_vm8 = vmpackc.low %vm1412_vm6, %vm4833_vm7 }
  0x23   : > { %v533_v18 = vshll.u32 %v4996_v14, 16  ;;  %v537_v19 = vshrl.u32 %v4996_v14, 16  ;;  %v1086_v30 = vrot.slane %v4996_v14, 2  ;;  %v4494_v5 = vld [vmem:[%s6309_s1 + $0xd4] ss:$8 sps:$4 sm:$0xff]   ;;  %v1256_v7 = vld [vmem:[%s6311_s3 + $0x68] sm:$0xff]  ;;  %v4278_v9 = vpack.c.bf16 %v1253_v4, %v1251_v3 }
  0x24   : > { %v937_v20 = vrot.slane %v526_v16, 1  ;;  %v938_v21 = vrot.slane %v528_v17, 2  ;;  %v530_v23 = vrot.slane %v528_v17, 1  ;;  %v1258_v8 = vld [vmem:[%s6311_s3 + $0x78] sm:$0xff]  ;;  %v1255_v13 = vld [vmem:[%s6311_s3 + $0x60] sm:$0xff]  ;;  %v1257_v15 = vld [vmem:[%s6311_s3 + $0x70] sm:$0xff] }
  0x25   : > { %v941_v24 = vrot.slane %v533_v18, 2  ;;  %v940_v25 = vrot.slane %v537_v19, 1  ;;  %616 = vmatpush1.bf16.msra.mxu0 %v4467_v22  ;;  %v535_v33 = vrot.slane %v533_v18, 1  ;;  %v5027_v36 = vsel %vm1084_vm1, %v1085_v29, %v1086_v30  ;;  %4275 = vmatpush1.bf16.msra.mxu1 %v4274_v0  ;;  %v4492_v10 = vld [vmem:[%s6309_s1 + $0xd0] ss:$8 sps:$4 sm:$0xff]   ;;  %v1260_v17 = vld [vmem:[%s6311_s3 + $0x88] sm:$0xff] }
  0x26   : > { %v939_v27 = vor.u32 %v938_v21, %v937_v20  ;;  %v531_v32 = vor.u32 %v530_v23, %v526_v16  ;;  %617 = vmatprep.subr.bf16.mxu0 %v4468_v26  ;;  %v4280_v11 = vpack.c.bf16 %v1258_v8, %v1256_v7  ;;  %v4497_v16 = vld [vmem:[%s6309_s1 + $0xe4] ss:$8 sps:$4 sm:$0xff]   ;;  %4277 = vmatprep.subr.bf16.mxu1 %v4276_v6  ;;  %v4495_v18 = vld [vmem:[%s6309_s1 + $0xe0] ss:$8 sps:$4 sm:$0xff]   ;;  %v1261_v21 = vld [vmem:[%s6311_s3 + $0x90] sm:$0xff]  ;;  %v793_v52 = vrot.slane %v4991_v12, 1 }
  0x27   : > { %v5011_v28 = vor.u32 %v941_v24, %v940_v25  ;;  %v539_v42 = vor.u32 %v537_v19, %v535_v33  ;;  %v1262_v19 = vld [vmem:[%s6311_s3 + $0x98] sm:$0xff]  ;;  %v1259_v20 = vld [vmem:[%s6311_s3 + $0x80] sm:$0xff]  ;;  %v4282_v23 = vpack.c.bf16 %v1257_v15, %v1255_v13  ;;  %v1264_v24 = vld [vmem:[%s6311_s3 + $0xa8] sm:$0xff]  ;;  %v794_v53 = vrot.slane %v4996_v14, 1  ;;  %s3655_s25 = sshll.u32 %s486_s23, 4  ;;  %s6340_s24 = sld [smem:[#allocation11_spill]]  ;;  %s6268_s25 = int_to_ptr.vmem [resolvable:$true] %s3655_s25 }
  0x28   : > { %v536_v38 = vsel %vm524_vm2, %v531_v32, %v535_v33  ;;  %v4500_v22 = vld [vmem:[%s6309_s1 + $0xf4] ss:$8 sps:$4 sm:$0xff]   ;;  %v4284_v26 = vpack.c.bf16 %v1262_v19, %v1260_v17  ;;  %v1263_v29 = vld [vmem:[%s6311_s3 + $0xa0] sm:$0xff]  ;;  %v4286_v33 = vpack.c.bf16 %v1261_v21, %v1259_v20  ;;  %v1276_v55 = vld [vmem:[%s6311_s3 + $0x108] sm:$0xff]  ;;  %s3643_s22 = scalar_lea.sflag [#allocation3], %s485_s29  ;;  %s4767_s27 = scalar_lea.vmem %s6268_s25, 16 }
  0x29   : > { %v5019_v34 = vsel %vm936_vm0, %v939_v27, %v5011_v28  ;;  %618 = vmatpush1.bf16.msra.mxu0 %v4470_v31  ;;  %4279 = vmatpush1.bf16.msra.mxu1 %v4278_v9  ;;  %v1266_v25 = vld [vmem:[%s6311_s3 + $0xb8] sm:$0xff]  ;;  %v1265_v31 = vld [vmem:[%s6311_s3 + $0xb0] sm:$0xff]  ;;  %v4503_v32 = vld [vmem:[%s6309_s1 + $0x104] ss:$8 sps:$4 sm:$0xff]   ;;  %v795_v61 = vsel %vm792_vm4, %v793_v52, %v794_v53  ;;  %vm3592_vm0 = vcmask 687104   ;;  %p4768_p11 = scmp.ne.s32.totalorder %s6268_s25, %s4767_s27  ;;  %s4835_s15 = smov [#allocation2]  }
  0x2a   : > { %724 = vmatprep.subr.bf16.mxu0 %v4473_v35  ;;  %4281 = vmatprep.subr.bf16.mxu1 %v4280_v11  ;;  %v4498_v27 = vld [vmem:[%s6309_s1 + $0xf0] ss:$8 sps:$4 sm:$0xff]   ;;  %v1268_v35 = vld [vmem:[%s6311_s3 + $0xc8] sm:$0xff]  ;;  %v4512_v59 = vld [vmem:[%s6309_s1 + $0x134] ss:$8 sps:$4 sm:$0xff]   ;;  %s4771_s18 = sshll.u32 %s4835_s15, 4  ;;  %s4772_s18 = int_to_ptr.vmem [resolvable:$false] %s4771_s18 }
  0x2b   : > { %v4509_v50 = vld [vmem:[%s6309_s1 + $0x124] ss:$8 sps:$4 sm:$0xff]   ;;  %v1278_v56 = vld [vmem:[%s6311_s3 + $0x118] sm:$0xff]  ;;  %v1277_v58 = vld [vmem:[%s6311_s3 + $0x110] sm:$0xff]  ;;  %p4769_p12 = pnand %p4768_p11, %p4954_p5  ;;  %s4773_s30 = scalar_lea.vmem %s4772_s18, 32 }
  0x2c   : > { %3740 = vmatmul.mubr.msk.bf16.vlgmr.msra.gmra.mrb[0].mxu0 %vm600_vm3, %v536_v38  ;;  %v4288_v38 = vpack.c.bf16 %v1266_v25, %v1264_v24  ;;  %v4300_v62 = vpack.c.bf16 %v1278_v56, %v1276_v55  ;;  %v4510_v63 = vld [vmem:[%s6309_s1 + $0x130] ss:$8 sps:$4 sm:$0xff]   ;;  %v4515_v0 = vld [vmem:[%s6309_s1 + $0x144] ss:$8 sps:$4 sm:$0xff]   ;;  %v4513_v3 = vld [vmem:[%s6309_s1 + $0x140] ss:$8 sps:$4 sm:$0xff]   ;;  %p4774_p0 = scmp.lt.s32.totalorder %s6268_s25, %s4772_s18  ;;  %p4775_p1 = scmp.lt.s32.totalorder %s4773_s30, %s4767_s27 }
  0x2d   : > { %725 = vmatpush1.bf16.msra.mxu0 %v4471_v37  ;;  %649 = vmatprep.mubr.bf16.mxu0 %v4831_v2  ;;  %v1270_v37 = vld [vmem:[%s6311_s3 + $0xd8] sm:$0xff]  ;;  %v4521_v6 = vld [vmem:[%s6309_s1 + $0x164] ss:$8 sps:$4 sm:$0xff]   ;;  %v4519_v7 = vld [vmem:[%s6309_s1 + $0x160] ss:$8 sps:$4 sm:$0xff]   ;;  %s6266_s21 = scalar_lea.hbm %s6340_s24, %s4212_s17  ;;  %p4770_p13 = pneg %p4769_p12 }
  0x2e   : > { %726 = vmatprep.subr.bf16.mxu0 %v4476_v39  ;;  %4283 = vmatpush1.bf16.msra.mxu1 %v4282_v23  ;;  %v4501_v39 = vld [vmem:[%s6309_s1 + $0x100] ss:$8 sps:$4 sm:$0xff]   ;;  %v4518_v4 = vld [vmem:[%s6309_s1 + $0x154] ss:$8 sps:$4 sm:$0xff]   ;;  %v4522_v9 = vld [vmem:[%s6309_s1 + $0x170] ss:$8 sps:$4 sm:$0xff]   ;;  %p4776_p2 = por %p4775_p1, %p4774_p0 }
  0x2f   : > { %4285 = vmatprep.subr.bf16.mxu1 %v4284_v26  ;;  %v4524_v8 = vld [vmem:[%s6309_s1 + $0x174] ss:$8 sps:$4 sm:$0xff]   ;;  %v4525_v11 = vld [vmem:[%s6309_s1 + $0x180] ss:$8 sps:$4 sm:$0xff]   ;;  %v4528_v15 = vld [vmem:[%s6309_s1 + $0x190] ss:$8 sps:$4 sm:$0xff]  }
  0x30   : > { %v4530_v13 = vld [vmem:[%s6309_s1 + $0x194] ss:$8 sps:$4 sm:$0xff]   ;;  %v4531_v17 = vld [vmem:[%s6309_s1 + $0x1a0] ss:$8 sps:$4 sm:$0xff]   ;;  %v4539_v19 = vld [vmem:[%s6309_s1 + $0x1c4] ss:$8 sps:$4 sm:$0xff]   ;;  %p4777_p3 = pnand %p4776_p2, %p4770_p13 }
  0x31   : > { %727 = vmatpush1.bf16.msra.mxu0 %v4474_v40  ;;  %v1267_v40 = vld [vmem:[%s6311_s3 + $0xc0] sm:$0xff]  ;;  %v4542_v21 = vld [vmem:[%s6309_s1 + $0x1d4] ss:$8 sps:$4 sm:$0xff]  }
  0x32   : > { %728 = vmatprep.subr.bf16.mxu0 %v4479_v41  ;;  %v1269_v41 = vld [vmem:[%s6311_s3 + $0xd0] sm:$0xff]  ;;  %4287 = vmatpush1.bf16.msra.mxu1 %v4286_v33  ;;  %v4537_v20 = vld [vmem:[%s6309_s1 + $0x1c0] ss:$8 sps:$4 sm:$0xff]   ;;  %v1282_v23 = vld [vmem:[%s6311_s3 + $0x138] sm:$0xff] }
  0x33   : > { %4289 = vmatprep.subr.bf16.mxu1 %v4288_v38  ;;  %v4294_v51 = vpack.c.bf16 %v1269_v41, %v1267_v40  ;;  %v1279_v25 = vld [vmem:[%s6311_s3 + $0x120] sm:$0xff] }
  0x34   : > { %3741 = vmatmul.mubr.msk.bf16.gmra.mrb[4].mxu0 %vm600_vm3, %v539_v42  ;;  %v4506_v42 = vld [vmem:[%s6309_s1 + $0x114] ss:$8 sps:$4 sm:$0xff]   ;;  %v1283_v26 = vld [vmem:[%s6311_s3 + $0x140] sm:$0xff] }
  0x35   : > { %729 = vmatpush1.bf16.msra.mxu0 %v4477_v43  ;;  %756 = vmatprep.mubr.bf16.mxu0 %v4831_v2  ;;  %v4290_v43 = vpack.c.bf16 %v1265_v31, %v1263_v29 }
  0x36   : > { %730 = vmatprep.subr.bf16.mxu0 %v4482_v44  ;;  %v1272_v44 = vld [vmem:[%s6311_s3 + $0xe8] sm:$0xff] }
  0x37   : > { %4291 = vmatpush1.bf16.msra.mxu1 %v4290_v43 }
  0x39   : > { %731 = vmatpush1.bf16.msra.mxu0 %v4480_v45  ;;  %v1274_v45 = vld [vmem:[%s6311_s3 + $0xf8] sm:$0xff] }
  0x3a   : > { %732 = vmatprep.subr.bf16.mxu0 %v4485_v46  ;;  %v4292_v46 = vpack.c.bf16 %v1270_v37, %v1268_v35  ;;  %v4296_v54 = vpack.c.bf16 %v1274_v45, %v1272_v44 }
  0x3c   : > { %4293 = vmatprep.subr.bf16.mxu1 %v4292_v46 }
  0x3d   : > { %733 = vmatpush1.bf16.msra.mxu0 %v4483_v47  ;;  %v4504_v47 = vld [vmem:[%s6309_s1 + $0x110] ss:$8 sps:$4 sm:$0xff]   ;;  %4295 = vmatpush1.bf16.msra.mxu1 %v4294_v51 }
  0x3e   : > { %734 = vmatprep.subr.bf16.mxu0 %v4488_v48  ;;  %v1271_v48 = vld [vmem:[%s6311_s3 + $0xe0] sm:$0xff]  ;;  %4297 = vmatprep.subr.bf16.mxu1 %v4296_v54 }
  0x41   : > { %735 = vmatpush1.bf16.msra.mxu0 %v4486_v49  ;;  %v1273_v49 = vld [vmem:[%s6311_s3 + $0xf0] sm:$0xff] }
  0x42   : > { %862 = vmatprep.subr.bf16.mxu0 %v4491_v57  ;;  %v4507_v57 = vld [vmem:[%s6309_s1 + $0x120] ss:$8 sps:$4 sm:$0xff]   ;;  %v4298_v60 = vpack.c.bf16 %v1273_v49, %v1271_v48 }
  0x44   : > { %3754 = vmatmul.mubr.msk.bf16.vlgmr.msra.gmra.mrb[0].mxu0 %vm600_vm3, %v4991_v12  ;;  %v1275_v12 = vld [vmem:[%s6311_s3 + $0x100] sm:$0xff]  ;;  %4299 = vmatpush1.bf16.msra.mxu1 %v4298_v60 }
  0x45   : > { %863 = vmatpush1.bf16.msra.mxu0 %v4489_v1  ;;  %766 = vmatprep.mubr.bf16.mxu0 %v4831_v2  ;;  %v4302_v1 = vpack.c.bf16 %v1277_v58, %v1275_v12 }
  0x46   : > { %864 = vmatprep.subr.bf16.mxu0 %v4494_v5  ;;  %4301 = vmatprep.subr.bf16.mxu1 %v4300_v62  ;;  %v4516_v5 = vld [vmem:[%s6309_s1 + $0x150] ss:$8 sps:$4 sm:$0xff]  }
  0x48   : > { %4303 = vmatpush1.bf16.msra.mxu1 %v4302_v1 }
  0x49   : > { %865 = vmatpush1.bf16.msra.mxu0 %v4492_v10  ;;  %v4527_v10 = vld [vmem:[%s6309_s1 + $0x184] ss:$8 sps:$4 sm:$0xff]  }
  0x4a   : > { %866 = vmatprep.subr.bf16.mxu0 %v4497_v16  ;;  %v4533_v16 = vld [vmem:[%s6309_s1 + $0x1a4] ss:$8 sps:$4 sm:$0xff]  }
  0x4c   : > { %3755 = vmatmul.mubr.msk.bf16.gmra.mrb[4].mxu0 %vm600_vm3, %v4996_v14 }
  0x4d   : > { %867 = vmatpush1.bf16.msra.mxu0 %v4495_v18  ;;  %894 = vmatprep.mubr.bf16.mxu0 %v4831_v2  ;;  %v4536_v18 = vld [vmem:[%s6309_s1 + $0x1b4] ss:$8 sps:$4 sm:$0xff]  }
  0x4e   : > { %868 = vmatprep.subr.bf16.mxu0 %v4500_v22  ;;  %v1280_v22 = vld [vmem:[%s6311_s3 + $0x128] sm:$0xff] }
  0x4f   : > { %v4304_v24 = vpack.c.bf16 %v1282_v23, %v1280_v22  ;;  %v4548_v22 = vld [vmem:[%s6313_s5 + $0xbc] ss:$8 sps:$4 sm:$0xff]   ;;  %v1396_v23 = vld [vmem:[%s6312_s4 + $0x8] sm:$0xff] }
  0x51   : > { %869 = vmatpush1.bf16.msra.mxu0 %v4498_v27  ;;  %4305 = vmatprep.subr.bf16.mxu1 %v4304_v24  ;;  %v1217_v27 = vlaneseq  ;;  %v4546_v24 = vld [vmem:[%s6313_s5 + $0xb8] ss:$8 sps:$4 sm:$0xff]  }
  0x52   : > { %870 = vmatprep.subr.bf16.mxu0 %v4503_v32  ;;  %v1215_v32 = vld [vmem:[%s6310_s2] sm:$0x3] }
  0x53   : > { %v5325_v29 = vshrl.u32 %v1217_v27, 7  ;;  %v4552_v27 = vld [vmem:[%s6313_s5 + $0xd8] ss:$8 sps:$4 sm:$0xff]  }
  0x55   : > { %871 = vmatpush1.bf16.msra.mxu0 %v4501_v39  ;;  %v1219_v31 = vsub.s32 0, %v5325_v29  ;;  %v1223_v33 = vsub.s32 1, %v5325_v29 }
  0x56   : > { %872 = vmatprep.subr.bf16.mxu0 %v4506_v42 }
  0x57   : > { %v1220_v35 = vrot.slane %v1215_v32, %v1219_v31  ;;  %v1224_v37 = vrot.slane %v1215_v32, %v1223_v33  ;;  %v4557_v32 = vld [vmem:[%s6313_s5 + $0xec] ss:$8 sps:$4 sm:$0xff]  }
  0x59   : > { %873 = vmatpush1.bf16.msra.mxu0 %v4504_v47 }
  0x5a   : > { %1010 = vmatprep.subr.bf16.mxu0 %v4509_v50 }
  0x5c   : > { %3780 = vmatmul.mubr.msk.bf16.vlgmr.msra.gmra.mrb[0].mxu0 %vm600_vm3, %v795_v61  ;;  %v4832_v61 = vmov 0.0  }
  0x5d   : > { %1011 = vmatpush1.bf16.msra.mxu0 %v4507_v57  ;;  %904 = vmatprep.mubr.bf16.mxu0 %v4831_v2 }
  0x5e   : > { %1012 = vmatprep.subr.bf16.mxu0 %v4512_v59 }
  0x61   : > { %1013 = vmatpush1.bf16.msra.mxu0 %v4510_v63 }
  0x62   : > { %1014 = vmatprep.subr.bf16.mxu0 %v4515_v0 }
  0x64   : > { %3781 = vmatmul.mubr.msk.bf16.gmra.mrb[4].mxu0 %vm600_vm3, %v794_v53 }
  0x65   : > { %1015 = vmatpush1.bf16.msra.mxu0 %v4513_v3  ;;  %1042 = vmatprep.mubr.bf16.mxu0 %v4831_v2 }
  0x66   : > { %1016 = vmatprep.subr.bf16.mxu0 %v4518_v4 }
  0x69   : > { %1017 = vmatpush1.bf16.msra.mxu0 %v4516_v5 }
  0x6a   : > { %1018 = vmatprep.subr.bf16.mxu0 %v4521_v6 }
  0x6d   : > { %1019 = vmatpush1.bf16.msra.mxu0 %v4519_v7 }
  0x6e   : > { %1020 = vmatprep.subr.bf16.mxu0 %v4524_v8 }
  0x71   : > { %1021 = vmatpush1.bf16.msra.mxu0 %v4522_v9 }
  0x72   : > { %1154 = vmatprep.subr.bf16.mxu0 %v4527_v10 }
  0x74   : > { %3806 = vmatmul.mubr.msk.bf16.vlgmr.msra.gmra.mrb[0].mxu0 %vm600_vm3, %v5019_v34  ;;  %v4534_v34 = vld [vmem:[%s6309_s1 + $0x1b0] ss:$8 sps:$4 sm:$0xff]  }
  0x75   : > { %1155 = vmatpush1.bf16.msra.mxu0 %v4525_v11  ;;  %1052 = vmatprep.mubr.bf16.mxu0 %v4831_v2 }
  0x76   : > { %1156 = vmatprep.subr.bf16.mxu0 %v4530_v13 }
  0x79   : > { %1157 = vmatpush1.bf16.msra.mxu0 %v4528_v15 }
  0x7a   : > { %1158 = vmatprep.subr.bf16.mxu0 %v4533_v16 }
  0x7c   : > { %3807 = vmatmul.mubr.msk.bf16.gmra.mrb[4].mxu0 %vm600_vm3, %v5011_v28  ;;  %v4540_v28 = vld [vmem:[%s6309_s1 + $0x1d0] ss:$8 sps:$4 sm:$0xff]  }
  0x7d   : > { %1159 = vmatpush1.bf16.msra.mxu0 %v4531_v17  ;;  %1186 = vmatprep.mubr.bf16.mxu0 %v4831_v2 }
  0x7e   : > { %1160 = vmatprep.subr.bf16.mxu0 %v4536_v18 }
  0x81   : > { %1161 = vmatpush1.bf16.msra.mxu0 %v4534_v34 }
  0x82   : > { %1162 = vmatprep.subr.bf16.mxu0 %v4539_v19  ;;  %v4545_v19 = vld [vmem:[%s6313_s5 + $0xac] ss:$8 sps:$4 sm:$0xff]  }
  0x85   : > { %1163 = vmatpush1.bf16.msra.mxu0 %v4537_v20 }
  0x86   : > { %1164 = vmatprep.subr.bf16.mxu0 %v4542_v21  ;;  %v1395_v21 = vld [vmem:[%s6312_s4] sm:$0xff] }
  0x89   : > { %1165 = vmatpush1.bf16.msra.mxu0 %v4540_v28  ;;  %v4543_v28 = vld [vmem:[%s6313_s5 + $0xa8] ss:$8 sps:$4 sm:$0xff]  }
  0x8c   : > { %3832 = vmatmul.mubr.msk.bf16.vlgmr.msra.gmra.mrb[0].mxu0 %vm600_vm3, %v5027_v36  ;;  %v1281_v36 = vld [vmem:[%s6311_s3 + $0x130] sm:$0xff] }
  0x8d   : > { %1196 = vmatprep.mubr.bf16.mxu0 %v4831_v2  ;;  %v4306_v14 = vpack.c.bf16 %v1281_v36, %v1279_v25  ;;  %v4551_v25 = vld [vmem:[%s6313_s5 + $0xcc] ss:$8 sps:$4 sm:$0xff]  }
  0x8e   : > { %v1397_v36 = vld [vmem:[%s6312_s4 + $0x10] sm:$0xff] }
  0x8f   : > { %4307 = vmatpush1.bf16.msra.mxu1 %v4306_v14  ;;  %v4549_v14 = vld [vmem:[%s6313_s5 + $0xc8] ss:$8 sps:$4 sm:$0xff]  }
  0x94   : > { %3833 = vmatmul.mubr.msk.bf16.gmra.mrb[4].mxu0 %vm600_vm3, %v1086_v30  ;;  %v1284_v30 = vld [vmem:[%s6311_s3 + $0x148] sm:$0xff] }
  0x95   : > { %1338 = vmatprep.subr.mxu1 %v1284_v30  ;;  %v4554_v30 = vld [vmem:[%s6313_s5 + $0xdc] ss:$8 sps:$4 sm:$0xff]  }
  0x96   : > { %1339 = vmatpush1.msra.mxu1 %v1283_v26  ;;  %v1398_v26 = vld [vmem:[%s6312_s4 + $0x18] sm:$0xf] }
 0x15f   : > { %v1188_v38 = vpop.f32.mrb[0].mxu0 }
 0x160   : > { %v1227_v39 = vadd.f32 %v1220_v35, %v1188_v38  ;;  %v1190_v40 = vpop.f32.mrb[1].mxu0  ;;  %v4558_v38 = vld [vmem:[%s6313_s5 + $0xf8] ss:$8 sps:$4 sm:$0xff]  }
 0x161   : > { %v1228_v41 = vadd.f32 %v1224_v37, %v1190_v40  ;;  %v1192_v42 = vpop.f32.mrb[2].mxu0  ;;  %v4561_v40 = vld [vmem:[%s6313_s5 + $0x108] ss:$8 sps:$4 sm:$0xff]  }
 0x162   : > { %v1194_v43 = vpop.f32.mrb[3].mxu0  ;;  %v1235_v46 = vmax.f32 %v1227_v39, 0.0  ;;  %v1229_v47 = vadd.f32 %v1220_v35, %v1192_v42  ;;  %v4563_v39 = vld [vmem:[%s6313_s5 + $0x10c] ss:$8 sps:$4 sm:$0xff]   ;;  %v4564_v42 = vld [vmem:[%s6313_s5 + $0x118] ss:$8 sps:$4 sm:$0xff]  }
 0x163   : > { %v1236_v44 = vmax.f32 %v1228_v41, 0.0  ;;  %v1230_v45 = vadd.f32 %v1224_v37, %v1194_v43  ;;  %v4566_v41 = vld [vmem:[%s6313_s5 + $0x11c] ss:$8 sps:$4 sm:$0xff]   ;;  %v4569_v43 = vld [vmem:[%s6313_s5 + $0x12c] ss:$8 sps:$4 sm:$0xff]  }
 0x164   : > { %v1237_v50 = vmax.f32 %v1229_v47, 0.0  ;;  %v3864_v47 = vld [vmem:[%s6313_s5 + $0x148] sm:$0xff] }
 0x165   : > { %v1238_v48 = vmax.f32 %v1230_v45, 0.0  ;;  %3834 = vmatprep.mubr.msk.f32.mxu1 %vm1285_vm5, %v1236_v44  ;;  %v4572_v45 = vld [vmem:[%s6313_s5 + $0x13c] ss:$8 sps:$4 sm:$0xff]  }
 0x166   : > { %1363 = vmatmul.mubr.f32.vlgmr.msra.gmra.mrb[0].mxu1 %v1235_v46 }
 0x167   : > { %v1198_v49 = vpop.f32.mrb[4].mxu0  ;;  %3835 = vmatprep.mubr.msk.f32.mxu1 %vm1285_vm5, %v1238_v48 }
 0x168   : > { %v1231_v51 = vadd.f32 %v1220_v35, %v1198_v49  ;;  %v1200_v52 = vpop.f32.mrb[5].mxu0  ;;  %v3885_v49 = vcombine.low %v3864_v47, %v3864_v47 }
 0x169   : > { %v1232_v53 = vadd.f32 %v1224_v37, %v1200_v52  ;;  %v1202_v54 = vpop.f32.mrb[6].mxu0 }
 0x16a   : > { %v1204_v55 = vpop.f32.mrb[7].mxu0  ;;  %1369 = vmatmul.mubr.f32.gmra.mrb[2].mxu1 %v1237_v50  ;;  %v1239_v12 = vmax.f32 %v1231_v51, 0.0  ;;  %v1233_v58 = vadd.f32 %v1220_v35, %v1202_v54  ;;  %v4555_v35 = vld [vmem:[%s6313_s5 + $0xe8] ss:$8 sps:$4 sm:$0xff]   ;;  %v4577_v51 = vld [vmem:[%s6313_s5 + $0x4] ss:$8 sps:$4 sm:$0xff]  }
 0x16b   : > { %v1240_v56 = vmax.f32 %v1232_v53, 0.0  ;;  %v1234_v57 = vadd.f32 %v1224_v37, %v1204_v55  ;;  %v4560_v37 = vld [vmem:[%s6313_s5 + $0xfc] ss:$8 sps:$4 sm:$0xff]  }
 0x16c   : > { %v1241_v60 = vmax.f32 %v1233_v58, 0.0 }
 0x16d   : > { %v1242_v59 = vmax.f32 %v1234_v57, 0.0  ;;  %3836 = vmatprep.mubr.msk.f32.mxu1 %vm1285_vm5, %v1240_v56 }
 0x16e   : > { %1375 = vmatmul.mubr.f32.gmra.mrb[4].mxu1 %v1239_v12 }
 0x16f   : > { %3837 = vmatprep.mubr.msk.f32.mxu1 %vm1285_vm5, %v1242_v59 }
 0x172   : > { %1381 = vmatmul.mubr.f32.gmra.mrb[6].mxu1 %v1241_v60 }
 0x173   : > { %1483 = vmatprep.mubr.f32.mxu1 %v4832_v61 }
 0x239   : > { %v1364_v62 = vpop.f32.mrb[0].mxu1 }
 0x23a   : > { %v1366_v63 = vpop.f32.mrb[1].mxu1  ;;  %v5347_v6 = vmax.f32 %v1235_v46, %v1364_v62  ;;  %v4570_v46 = vld [vmem:[%s6313_s5 + $0x138] ss:$8 sps:$4 sm:$0xff]  }
 0x23b   : > { %v5343_v4 = vmax.f32 %v1236_v44, %v1366_v63  ;;  %v4567_v44 = vld [vmem:[%s6313_s5 + $0x128] ss:$8 sps:$4 sm:$0xff]  }
 0x23d   : > { %v1370_v0 = vpop.f32.mrb[2].mxu1 }
 0x23e   : > { %v5341_v1 = vmax.f32 %v1237_v50, %v1370_v0  ;;  %v1372_v3 = vpop.f32.mrb[3].mxu1  ;;  %v1687_v50 = vsel %vm1412_vm6, %v3885_v49, 0  ;;  %v4593_v49 = vld [vmem:[%s6313_s5 + $0x60] ss:$8 sps:$4 sm:$0xff]  }
 0x23f   : > { %v5345_v5 = vmax.f32 %v1238_v48, %v1372_v3  ;;  %v3886_v48 = vcombine.high %v3864_v47, %v3864_v47  ;;  %v4590_v47 = vld [vmem:[%s6313_s5 + $0x50] ss:$8 sps:$4 sm:$0xff]  }
 0x240   : > { %v4310_v9 = vpack.c.bf16 %v5341_v1, %v5347_v6 }
 0x241   : > { %v4308_v7 = vpack.c.bf16 %v5345_v5, %v5343_v4  ;;  %v1376_v8 = vpop.f32.mrb[4].mxu1 }
 0x242   : > { %v1378_v10 = vpop.f32.mrb[5].mxu1  ;;  %v5359_v18 = vmax.f32 %v1239_v12, %v1376_v8 }
 0x243   : > { %4309 = vmatprep.subr.bf16.mxu1 %v4308_v7  ;;  %v5355_v16 = vmax.f32 %v1240_v56, %v1378_v10 }
 0x244   : > { %4311 = vmatpush1.bf16.msra.mxu1 %v4310_v9 }
 0x245   : > { %v1382_v11 = vpop.f32.mrb[6].mxu1 }
 0x246   : > { %v5353_v13 = vmax.f32 %v1241_v60, %v1382_v11  ;;  %v1384_v15 = vpop.f32.mrb[7].mxu1 }
 0x247   : > { %v5357_v17 = vmax.f32 %v1242_v59, %v1384_v15 }
 0x248   : > { %v4315_v20 = vpack.c.bf16 %v5353_v13, %v5359_v18 }
 0x249   : > { %v4312_v34 = vpack.c.bf16 %v5357_v17, %v5355_v16 }
 0x24b   : > { %4314 = vmatprep.subr.msk.bf16.mxu1 %vm4313_vm8, %v4312_v34 }
 0x24c   : > { %4317 = vmatpush1.bf16.msk.msra.mxu1 %vm4313_vm8, %v4315_v20 }
 0x24d   : > { %1692 = vmatprep.subr.bf16.mxu1 %v4545_v19 }
 0x24f   : > { %3840 = vmatmul.mubr.msk.f32.vlgmr.msra.gmra.mrb[8].mxu1 %vm1399_vm9, %v1395_v21 }
 0x250   : > { %1489 = vmatprep.mubr.f32.mxu1 %v4832_v61  ;;  %1693 = vmatpush1.bf16.msra.mxu1 %v4543_v28 }
 0x251   : > { %1694 = vmatprep.subr.bf16.mxu1 %v4548_v22 }
 0x253   : > { %3841 = vmatmul.mubr.msk.f32.gmra.mrb[10].mxu1 %vm1399_vm9, %v1396_v23 }
 0x254   : > { %1495 = vmatprep.mubr.f32.mxu1 %v4832_v61  ;;  %1695 = vmatpush1.bf16.msra.mxu1 %v4546_v24 }
 0x255   : > { %1696 = vmatprep.subr.bf16.mxu1 %v4551_v25  ;;  %v4575_v25 = vld [vmem:[%s6313_s5] ss:$8 sps:$4 sm:$0xff]  }
 0x257   : > { %3842 = vmatmul.mubr.msk.f32.gmra.mrb[12].mxu1 %vm1399_vm9, %v1397_v36 }
 0x258   : > { %1501 = vmatprep.mubr.f32.mxu1 %v4832_v61  ;;  %1697 = vmatpush1.bf16.msra.mxu1 %v4549_v14 }
 0x259   : > { %1698 = vmatprep.subr.bf16.mxu1 %v4554_v30 }
 0x25b   : > { %3843 = vmatmul.mubr.msk.f32.gmra.mrb[14].mxu1 %vm1399_vm9, %v1398_v26 }
 0x25c   : > { %1699 = vmatpush1.bf16.msra.mxu1 %v4552_v27 }
 0x25d   : > { %1700 = vmatprep.subr.bf16.mxu1 %v4557_v32  ;;  %v4580_v32 = vld [vmem:[%s6313_s5 + $0x14] ss:$8 sps:$4 sm:$0xff]  }
 0x260   : > { %1701 = vmatpush1.bf16.msra.mxu1 %v4555_v35 }
 0x261   : > { %1702 = vmatprep.subr.bf16.mxu1 %v4560_v37 }
 0x264   : > { %1703 = vmatpush1.bf16.msra.mxu1 %v4558_v38 }
 0x265   : > { %1704 = vmatprep.subr.bf16.mxu1 %v4563_v39  ;;  %v4578_v39 = vld [vmem:[%s6313_s5 + $0x10] ss:$8 sps:$4 sm:$0xff]  }
 0x268   : > { %1705 = vmatpush1.bf16.msra.mxu1 %v4561_v40  ;;  %v4583_v40 = vld [vmem:[%s6313_s5 + $0x24] ss:$8 sps:$4 sm:$0xff]  }
 0x269   : > { %1706 = vmatprep.subr.bf16.mxu1 %v4566_v41  ;;  %v4581_v41 = vld [vmem:[%s6313_s5 + $0x20] ss:$8 sps:$4 sm:$0xff]  }
 0x26c   : > { %1707 = vmatpush1.bf16.msra.mxu1 %v4564_v42  ;;  %v4586_v42 = vld [vmem:[%s6313_s5 + $0x34] ss:$8 sps:$4 sm:$0xff]  }
 0x26d   : > { %1708 = vmatprep.subr.bf16.mxu1 %v4569_v43  ;;  %v4584_v43 = vld [vmem:[%s6313_s5 + $0x30] ss:$8 sps:$4 sm:$0xff]  }
 0x270   : > { %1709 = vmatpush1.bf16.msra.mxu1 %v4567_v44  ;;  %v4589_v44 = vld [vmem:[%s6313_s5 + $0x44] ss:$8 sps:$4 sm:$0xff]  }
 0x271   : > { %1710 = vmatprep.subr.bf16.mxu1 %v4572_v45  ;;  %v4587_v45 = vld [vmem:[%s6313_s5 + $0x40] ss:$8 sps:$4 sm:$0xff]  }
 0x274   : > { %1711 = vmatpush1.bf16.msra.mxu1 %v4570_v46  ;;  %v4592_v46 = vld [vmem:[%s6313_s5 + $0x54] ss:$8 sps:$4 sm:$0xff]  }
 0x275   : > { %3887 = vmatprep.subr.msk.bf16.mxu1 %vm1412_vm6, %v3886_v48  ;;  %v4595_v48 = vld [vmem:[%s6313_s5 + $0x64] ss:$8 sps:$4 sm:$0xff]  }
 0x278   : > { %1713 = vmatpush1.bf16.msra.mxu1 %v1687_v50  ;;  %v4598_v50 = vld [vmem:[%s6313_s5 + $0x74] ss:$8 sps:$4 sm:$0xff]  }
 0x279   : > { %1860 = vmatprep.subr.bf16.mxu1 %v4577_v51  ;;  %v4596_v51 = vld [vmem:[%s6313_s5 + $0x70] ss:$8 sps:$4 sm:$0xff]  }
 0x322   : > { %v1485_v52 = vpop.f32.mrb[8].mxu1 }
 0x323   : > { %v1487_v53 = vpop.f32.mrb[9].mxu1  ;;  %v1508_v55 = vmax.f32 %v5347_v6, %v1485_v52  ;;  %v4601_v52 = vld [vmem:[%s6313_s5 + $0x84] ss:$8 sps:$4 sm:$0xff]  }
 0x324   : > { %v1509_v12 = vmax.f32 %v5343_v4, %v1487_v53  ;;  %v4599_v53 = vld [vmem:[%s6313_s5 + $0x80] ss:$8 sps:$4 sm:$0xff]  }
 0x326   : > { %v1491_v54 = vpop.f32.mrb[10].mxu1 }
 0x327   : > { %v1510_v56 = vmax.f32 %v5341_v1, %v1491_v54  ;;  %v1493_v57 = vpop.f32.mrb[11].mxu1  ;;  %v4604_v54 = vld [vmem:[%s6313_s5 + $0x94] ss:$8 sps:$4 sm:$0xff]  }
 0x328   : > { %v1511_v58 = vmax.f32 %v5345_v5, %v1493_v57 }
 0x329   : > { %v5457_v59 = vpack.c.bf16 %v1510_v56, %v1508_v55  ;;  %v1540_v55 = vld [vmem:[%s6313_s5 + $0xa0] sm:$0xff]  ;;  %v4602_v56 = vld [vmem:[%s6313_s5 + $0x90] ss:$8 sps:$4 sm:$0xff]  }
 0x32a   : > { %v1517_v60 = vpack.c.bf16 %v1511_v58, %v1509_v12  ;;  %v1497_v62 = vpop.f32.mrb[12].mxu1  ;;  %v3911_v57 = vcombine.high %v1540_v55, %v1540_v55  ;;  %v3910_v12 = vcombine.low %v1540_v55, %v1540_v55 }
 0x32b   : > { %v1499_v63 = vpop.f32.mrb[13].mxu1  ;;  %v1512_v3 = vmax.f32 %v5359_v18, %v1497_v62  ;;  %v1567_v4 = vrot.slane %v5457_v59, 1  ;;  %v1933_v5 = vrot.slane %v5457_v59, 2  ;;  %v2138_v15 = vrot.slane %v5457_v59, 3  ;;  %v4607_v62 = vld [vmem:[%s6313_s5 + $0x150] ss:$8 sps:$4 sm:$0xff]  }
 0x32c   : > { %v1513_v6 = vmax.f32 %v5355_v16, %v1499_v63  ;;  %v1570_v10 = vrot.slane %v1517_v60, 1  ;;  %v1936_v11 = vrot.slane %v1517_v60, 2  ;;  %v2141_v18 = vrot.slane %v1517_v60, 3  ;;  %v4612_v63 = vld [vmem:[%s6313_s5 + $0x164] ss:$8 sps:$4 sm:$0xff]  }
 0x32d   : > { %v2343_v19 = vrot.slane %v5457_v59, 4  ;;  %v1855_v58 = vsel %vm1412_vm6, %v3910_v12, 0  ;;  %v4673_v12 = vld [vmem:[%s6313_s5 + $0x2a4] ss:$8 sps:$4 sm:$0xff]  }
 0x32e   : > { %v1503_v0 = vpop.f32.mrb[14].mxu1 }
 0x32f   : > { %v1514_v7 = vmax.f32 %v5353_v13, %v1503_v0  ;;  %v1505_v8 = vpop.f32.mrb[15].mxu1  ;;  %v2346_v13 = vrot.slane %v1517_v60, 4  ;;  %v4610_v0 = vld [vmem:[%s6313_s5 + $0x160] ss:$8 sps:$4 sm:$0xff]  }
 0x330   : > { %v1515_v1 = vmax.f32 %v5357_v17, %v1505_v8  ;;  %v4616_v8 = vld [vmem:[%s6313_s5 + $0x180] ss:$8 sps:$4 sm:$0xff]  }
 0x331   : > { %v5465_v9 = vpack.c.bf16 %v1514_v7, %v1512_v3  ;;  %v4615_v3 = vld [vmem:[%s6313_s5 + $0x174] ss:$8 sps:$4 sm:$0xff]   ;;  %v4613_v7 = vld [vmem:[%s6313_s5 + $0x170] ss:$8 sps:$4 sm:$0xff]  }
 0x332   : > { %v5468_v34 = vpack.c.bf16 %v1515_v1, %v1513_v6  ;;  %v4621_v6 = vld [vmem:[%s6313_s5 + $0x194] ss:$8 sps:$4 sm:$0xff]   ;;  %v4619_v1 = vld [vmem:[%s6313_s5 + $0x190] ss:$8 sps:$4 sm:$0xff]  }
 0x333   : > { %v1568_v16 = vrot.slane %v5465_v9, 1  ;;  %v1934_v17 = vrot.slane %v5465_v9, 2  ;;  %v2139_v20 = vrot.slane %v5465_v9, 3  ;;  %v2344_v21 = vrot.slane %v5465_v9, 4 }
 0x334   : > { %v1571_v28 = vrot.slane %v5468_v34, 1  ;;  %v1937_v22 = vrot.slane %v5468_v34, 2  ;;  %v2142_v23 = vrot.slane %v5468_v34, 3  ;;  %v2347_v24 = vrot.slane %v5468_v34, 4 }
 0x335   : > { %v1569_v36 = vsel %vm792_vm4, %v1567_v4, %v1568_v16  ;;  %v5486_v14 = vsel %vm1084_vm1, %v1933_v5, %v1934_v17  ;;  %v5491_v30 = vsel %vm2137_vm10, %v2138_v15, %v2139_v20  ;;  %v5496_v26 = vsel %vm1412_vm6, %v2343_v19, %v2344_v21  ;;  %v4624_v4 = vld [vmem:[%s6313_s5 + $0x1a4] ss:$8 sps:$4 sm:$0xff]   ;;  %v4622_v5 = vld [vmem:[%s6313_s5 + $0x1a0] ss:$8 sps:$4 sm:$0xff]   ;;  %v4631_v19 = vld [vmem:[%s6313_s5 + $0x1d0] ss:$8 sps:$4 sm:$0xff]  }
 0x336   : > { %v1572_v27 = vsel %vm792_vm4, %v1570_v10, %v1571_v28  ;;  %v5505_v35 = vsel %vm1084_vm1, %v1936_v11, %v1937_v22  ;;  %v5510_v37 = vsel %vm2137_vm10, %v2141_v18, %v2142_v23  ;;  %v5516_v38 = vsel %vm1412_vm6, %v2346_v13, %v2347_v24  ;;  %v4627_v10 = vld [vmem:[%s6313_s5 + $0x1b4] ss:$8 sps:$4 sm:$0xff]   ;;  %v4625_v11 = vld [vmem:[%s6313_s5 + $0x1b0] ss:$8 sps:$4 sm:$0xff]   ;;  %v4630_v15 = vld [vmem:[%s6313_s5 + $0x1c4] ss:$8 sps:$4 sm:$0xff]  }
 0x337   : > { %3888 = vmatprep.mubr.msk.bf16.mxu1 %vm1285_vm5, %v1572_v27  ;;  %v4628_v18 = vld [vmem:[%s6313_s5 + $0x1c0] ss:$8 sps:$4 sm:$0xff]   ;;  %v4633_v13 = vld [vmem:[%s6313_s5 + $0x1d4] ss:$8 sps:$4 sm:$0xff]   ;;  %vm3640_vm1 = vcmask 73728  }
 0x338   : > { %1725 = vmatmul.mubr.bf16.vlgmr.msra.gmra.mrb[16].mxu1 %v1569_v36 }
 0x339   : > { %1861 = vmatpush1.bf16.msra.mxu1 %v4575_v25  ;;  %3889 = vmatprep.mubr.msk.bf16.mxu1 %vm1285_vm5, %v1571_v28  ;;  %v3935_v28 = vld [vmem:[%s6313_s5 + $0x1f0] sm:$0xff]  ;;  %v4634_v25 = vld [vmem:[%s6313_s5 + $0x1e0] ss:$8 sps:$4 sm:$0xff]  }
 0x33a   : > { %1862 = vmatprep.subr.bf16.mxu1 %v4580_v32  ;;  %v3957_v36 = vcombine.high %v3935_v28, %v3935_v28  ;;  %v3956_v27 = vcombine.low %v3935_v28, %v3935_v28 }
 0x33c   : > { %v2053_v32 = vsel %vm1412_vm6, %v3956_v27, 0  ;;  %v2550_v27 = vld [vmem:[%s6315_s7 + $0x8] sm:$0xff] }
 0x33d   : > { %1863 = vmatpush1.bf16.msra.mxu1 %v4578_v39  ;;  %v4639_v39 = vld [vmem:[%s6313_s5 + $0x1f8] ss:$8 sps:$4 sm:$0xff]  }
 0x33e   : > { %1864 = vmatprep.subr.bf16.mxu1 %v4583_v40  ;;  %v4644_v40 = vld [vmem:[%s6313_s5 + $0x20c] ss:$8 sps:$4 sm:$0xff]  }
 0x340   : > { %1735 = vmatmul.mubr.bf16.gmra.mrb[20].mxu1 %v1568_v16  ;;  %v4636_v16 = vld [vmem:[%s6313_s5 + $0x1e4] ss:$8 sps:$4 sm:$0xff]  }
 0x341   : > { %1865 = vmatpush1.bf16.msra.mxu1 %v4581_v41  ;;  %3913 = vmatprep.mubr.msk.bf16.mxu1 %vm1285_vm5, %v1517_v60  ;;  %v4609_v60 = vld [vmem:[%s6313_s5 + $0x154] ss:$8 sps:$4 sm:$0xff]   ;;  %v4642_v41 = vld [vmem:[%s6313_s5 + $0x208] ss:$8 sps:$4 sm:$0xff]  }
 0x342   : > { %1866 = vmatprep.subr.bf16.mxu1 %v4586_v42  ;;  %v4647_v42 = vld [vmem:[%s6313_s5 + $0x21c] ss:$8 sps:$4 sm:$0xff]  }
 0x345   : > { %1867 = vmatpush1.bf16.msra.mxu1 %v4584_v43  ;;  %v4645_v43 = vld [vmem:[%s6313_s5 + $0x218] ss:$8 sps:$4 sm:$0xff]  }
 0x346   : > { %1868 = vmatprep.subr.bf16.mxu1 %v4589_v44  ;;  %v4653_v44 = vld [vmem:[%s6313_s5 + $0x23c] ss:$8 sps:$4 sm:$0xff]  }
 0x349   : > { %1869 = vmatpush1.bf16.msra.mxu1 %v4587_v45  ;;  %v4651_v45 = vld [vmem:[%s6313_s5 + $0x238] ss:$8 sps:$4 sm:$0xff]  }
 0x34a   : > { %1870 = vmatprep.subr.bf16.mxu1 %v4592_v46  ;;  %v4659_v46 = vld [vmem:[%s6313_s5 + $0x25c] ss:$8 sps:$4 sm:$0xff]  }
 0x34d   : > { %1871 = vmatpush1.bf16.msra.mxu1 %v4590_v47  ;;  %v4657_v47 = vld [vmem:[%s6313_s5 + $0x258] ss:$8 sps:$4 sm:$0xff]  }
 0x34e   : > { %1872 = vmatprep.subr.bf16.mxu1 %v4595_v48  ;;  %v4662_v48 = vld [vmem:[%s6313_s5 + $0x26c] ss:$8 sps:$4 sm:$0xff]  }
 0x351   : > { %1873 = vmatpush1.bf16.msra.mxu1 %v4593_v49  ;;  %v4660_v49 = vld [vmem:[%s6313_s5 + $0x268] ss:$8 sps:$4 sm:$0xff]  }
 0x352   : > { %1874 = vmatprep.subr.bf16.mxu1 %v4598_v50  ;;  %v4665_v50 = vld [vmem:[%s6313_s5 + $0x27c] ss:$8 sps:$4 sm:$0xff]  }
 0x355   : > { %1875 = vmatpush1.bf16.msra.mxu1 %v4596_v51  ;;  %v4663_v51 = vld [vmem:[%s6313_s5 + $0x278] ss:$8 sps:$4 sm:$0xff]  }
 0x356   : > { %1876 = vmatprep.subr.bf16.mxu1 %v4601_v52  ;;  %v4668_v52 = vld [vmem:[%s6313_s5 + $0x28c] ss:$8 sps:$4 sm:$0xff]  }
 0x359   : > { %1877 = vmatpush1.bf16.msra.mxu1 %v4599_v53  ;;  %v3981_v53 = vld [vmem:[%s6313_s5 + $0x298] sm:$0xff] }
 0x35a   : > { %1878 = vmatprep.subr.bf16.mxu1 %v4604_v54  ;;  %v4666_v54 = vld [vmem:[%s6313_s5 + $0x288] ss:$8 sps:$4 sm:$0xff]   ;;  %v4003_v55 = vcombine.high %v3981_v53, %v3981_v53 }
 0x35d   : > { %1879 = vmatpush1.bf16.msra.mxu1 %v4602_v56  ;;  %v4002_v56 = vcombine.low %v3981_v53, %v3981_v53 }
 0x35e   : > { %3912 = vmatprep.subr.msk.bf16.mxu1 %vm1412_vm6, %v3911_v57 }
 0x35f   : > { %v2258_v57 = vsel %vm1412_vm6, %v4002_v56, 0  ;;  %v2570_v56 = vld [vmem:[%s6315_s7 + $0xa8] sm:$0xff] }
 0x361   : > { %1881 = vmatpush1.bf16.msra.mxu1 %v1855_v58  ;;  %v4671_v58 = vld [vmem:[%s6313_s5 + $0x2a0] ss:$8 sps:$4 sm:$0xff]  }
 0x362   : > { %2058 = vmatprep.subr.bf16.mxu1 %v4609_v60  ;;  %v4676_v60 = vld [vmem:[%s6313_s5 + $0x2b4] ss:$8 sps:$4 sm:$0xff]  }
 0x364   : > { %1893 = vmatmul.mubr.bf16.vlgmr.msra.gmra.mrb[16].mxu1 %v5457_v59  ;;  %v4618_v59 = vld [vmem:[%s6313_s5 + $0x184] ss:$8 sps:$4 sm:$0xff]  }
 0x365   : > { %3914 = vmatprep.mubr.msk.bf16.mxu1 %vm1285_vm5, %v5468_v34  ;;  %2059 = vmatpush1.bf16.msra.mxu1 %v4607_v62  ;;  %v4674_v62 = vld [vmem:[%s6313_s5 + $0x2b0] ss:$8 sps:$4 sm:$0xff]  }
 0x366   : > { %2060 = vmatprep.subr.bf16.mxu1 %v4612_v63  ;;  %v4679_v63 = vld [vmem:[%s6313_s5 + $0x2c4] ss:$8 sps:$4 sm:$0xff]  }
 0x369   : > { %2061 = vmatpush1.bf16.msra.mxu1 %v4610_v0  ;;  %v4677_v0 = vld [vmem:[%s6313_s5 + $0x2c0] ss:$8 sps:$4 sm:$0xff]  }
 0x36a   : > { %2062 = vmatprep.subr.bf16.mxu1 %v4615_v3  ;;  %v4685_v3 = vld [vmem:[%s6313_s5 + $0x2e4] ss:$8 sps:$4 sm:$0xff]  }
 0x36c   : > { %1903 = vmatmul.mubr.bf16.gmra.mrb[24].mxu1 %v5465_v9  ;;  %v2549_v9 = vld [vmem:[%s6315_s7] sm:$0xff] }
 0x36d   : > { %2063 = vmatpush1.bf16.msra.mxu1 %v4613_v7  ;;  %3959 = vmatprep.mubr.msk.bf16.mxu1 %vm1285_vm5, %v5505_v35  ;;  %v4641_v35 = vld [vmem:[%s6313_s5 + $0x1fc] ss:$8 sps:$4 sm:$0xff]   ;;  %v4683_v7 = vld [vmem:[%s6313_s5 + $0x2e0] ss:$8 sps:$4 sm:$0xff]  }
 0x36e   : > { %2064 = vmatprep.subr.bf16.mxu1 %v4618_v59  ;;  %v4691_v59 = vld [vmem:[%s6313_s5 + $0x304] ss:$8 sps:$4 sm:$0xff]  }
 0x371   : > { %2065 = vmatpush1.bf16.msra.mxu1 %v4616_v8  ;;  %v4689_v8 = vld [vmem:[%s6313_s5 + $0x300] ss:$8 sps:$4 sm:$0xff]  }
 0x372   : > { %2066 = vmatprep.subr.bf16.mxu1 %v4621_v6  ;;  %v4694_v6 = vld [vmem:[%s6313_s5 + $0x314] ss:$8 sps:$4 sm:$0xff]  }
 0x375   : > { %2067 = vmatpush1.bf16.msra.mxu1 %v4619_v1  ;;  %v4692_v1 = vld [vmem:[%s6313_s5 + $0x310] ss:$8 sps:$4 sm:$0xff]  }
 0x376   : > { %2068 = vmatprep.subr.bf16.mxu1 %v4624_v4  ;;  %v4697_v4 = vld [vmem:[%s6313_s5 + $0x324] ss:$8 sps:$4 sm:$0xff]  }
 0x379   : > { %2069 = vmatpush1.bf16.msra.mxu1 %v4622_v5  ;;  %v4695_v5 = vld [vmem:[%s6313_s5 + $0x320] ss:$8 sps:$4 sm:$0xff]  }
 0x37a   : > { %2070 = vmatprep.subr.bf16.mxu1 %v4627_v10  ;;  %v4700_v10 = vld [vmem:[%s6313_s5 + $0x334] ss:$8 sps:$4 sm:$0xff]  }
 0x37d   : > { %2071 = vmatpush1.bf16.msra.mxu1 %v4625_v11  ;;  %v4027_v11 = vld [vmem:[%s6313_s5 + $0x340] sm:$0xff] }
 0x37e   : > { %2072 = vmatprep.subr.bf16.mxu1 %v4630_v15  ;;  %v4698_v15 = vld [vmem:[%s6313_s5 + $0x330] ss:$8 sps:$4 sm:$0xff]  }
 0x381   : > { %2073 = vmatpush1.bf16.msra.mxu1 %v4628_v18  ;;  %v4049_v18 = vcombine.high %v4027_v11, %v4027_v11 }
 0x382   : > { %2074 = vmatprep.subr.bf16.mxu1 %v4633_v13  ;;  %v4048_v13 = vcombine.low %v4027_v11, %v4027_v11 }
 0x385   : > { %2075 = vmatpush1.bf16.msra.mxu1 %v4631_v19  ;;  %v2463_v19 = vsel %vm1412_vm6, %v4048_v13, 0 }
 0x386   : > { %2076 = vmatprep.subr.bf16.mxu1 %v4636_v16 }
 0x389   : > { %2077 = vmatpush1.bf16.msra.mxu1 %v4634_v25 }
 0x38a   : > { %3958 = vmatprep.subr.msk.bf16.mxu1 %vm1412_vm6, %v3957_v36 }
 0x38d   : > { %2079 = vmatpush1.bf16.msra.mxu1 %v2053_v32  ;;  %v2554_v32 = vld [vmem:[%s6315_s7 + $0x28] sm:$0xff] }
 0x38e   : > { %2263 = vmatprep.subr.bf16.mxu1 %v4641_v35  ;;  %v2556_v35 = vld [vmem:[%s6315_s7 + $0x38] sm:$0xff] }
 0x390   : > { %2091 = vmatmul.mubr.bf16.vlgmr.msra.gmra.mrb[16].mxu1 %v5486_v14  ;;  %v4648_v14 = vld [vmem:[%s6313_s5 + $0x228] ss:$8 sps:$4 sm:$0xff]  }
 0x391   : > { %3960 = vmatprep.mubr.msk.bf16.mxu1 %vm1285_vm5, %v1937_v22  ;;  %2264 = vmatpush1.bf16.msra.mxu1 %v4639_v39  ;;  %v4650_v22 = vld [vmem:[%s6313_s5 + $0x22c] ss:$8 sps:$4 sm:$0xff]   ;;  %v2553_v39 = vld [vmem:[%s6315_s7 + $0x20] sm:$0xff] }
 0x392   : > { %2265 = vmatprep.subr.bf16.mxu1 %v4644_v40  ;;  %v4322_v40 = vpack.c.bf16 %v2556_v35, %v2554_v32 }
 0x395   : > { %2266 = vmatpush1.bf16.msra.mxu1 %v4642_v41  ;;  %v2555_v41 = vld [vmem:[%s6315_s7 + $0x30] sm:$0xff] }
 0x396   : > { %2267 = vmatprep.subr.bf16.mxu1 %v4647_v42  ;;  %v2558_v42 = vld [vmem:[%s6315_s7 + $0x48] sm:$0xff] }
 0x398   : > { %2101 = vmatmul.mubr.bf16.gmra.mrb[28].mxu1 %v1934_v17  ;;  %v4656_v17 = vld [vmem:[%s6313_s5 + $0x24c] ss:$8 sps:$4 sm:$0xff]  }
 0x399   : > { %2268 = vmatpush1.bf16.msra.mxu1 %v4645_v43  ;;  %4005 = vmatprep.mubr.msk.bf16.mxu1 %vm1285_vm5, %v5510_v37  ;;  %v4654_v37 = vld [vmem:[%s6313_s5 + $0x248] ss:$8 sps:$4 sm:$0xff]   ;;  %v2560_v43 = vld [vmem:[%s6315_s7 + $0x58] sm:$0xff] }
 0x39a   : > { %2269 = vmatprep.subr.bf16.mxu1 %v4650_v22  ;;  %v4324_v22 = vpack.c.bf16 %v2555_v41, %v2553_v39 }
 0x39d   : > { %2270 = vmatpush1.bf16.msra.mxu1 %v4648_v14  ;;  %v4326_v14 = vpack.c.bf16 %v2560_v43, %v2558_v42 }
 0x39e   : > { %2271 = vmatprep.subr.bf16.mxu1 %v4653_v44  ;;  %v2557_v44 = vld [vmem:[%s6315_s7 + $0x40] sm:$0xff] }
 0x3a1   : > { %2272 = vmatpush1.bf16.msra.mxu1 %v4651_v45  ;;  %v2559_v45 = vld [vmem:[%s6315_s7 + $0x50] sm:$0xff] }
 0x3a2   : > { %2273 = vmatprep.subr.bf16.mxu1 %v4656_v17  ;;  %v2562_v17 = vld [vmem:[%s6315_s7 + $0x68] sm:$0xff] }
 0x3a5   : > { %2274 = vmatpush1.bf16.msra.mxu1 %v4654_v37  ;;  %v2564_v37 = vld [vmem:[%s6315_s7 + $0x78] sm:$0xff] }
 0x3a6   : > { %2275 = vmatprep.subr.bf16.mxu1 %v4659_v46  ;;  %v4328_v46 = vpack.c.bf16 %v2559_v45, %v2557_v44 }
 0x3a9   : > { %2276 = vmatpush1.bf16.msra.mxu1 %v4657_v47  ;;  %v4330_v47 = vpack.c.bf16 %v2564_v37, %v2562_v17 }
 0x3aa   : > { %2277 = vmatprep.subr.bf16.mxu1 %v4662_v48  ;;  %v2561_v48 = vld [vmem:[%s6315_s7 + $0x60] sm:$0xff] }
 0x3ad   : > { %2278 = vmatpush1.bf16.msra.mxu1 %v4660_v49  ;;  %v2563_v49 = vld [vmem:[%s6315_s7 + $0x70] sm:$0xff] }
 0x3ae   : > { %2279 = vmatprep.subr.bf16.mxu1 %v4665_v50  ;;  %v2566_v50 = vld [vmem:[%s6315_s7 + $0x88] sm:$0xff] }
 0x3b1   : > { %2280 = vmatpush1.bf16.msra.mxu1 %v4663_v51  ;;  %v2568_v51 = vld [vmem:[%s6315_s7 + $0x98] sm:$0xff] }
 0x3b2   : > { %2281 = vmatprep.subr.bf16.mxu1 %v4668_v52  ;;  %v4332_v52 = vpack.c.bf16 %v2563_v49, %v2561_v48  ;;  %v4334_v53 = vpack.c.bf16 %v2568_v51, %v2566_v50 }
 0x3b5   : > { %2282 = vmatpush1.bf16.msra.mxu1 %v4666_v54  ;;  %v2565_v54 = vld [vmem:[%s6315_s7 + $0x80] sm:$0xff] }
 0x3b6   : > { %4004 = vmatprep.subr.msk.bf16.mxu1 %vm1412_vm6, %v4003_v55  ;;  %v2567_v55 = vld [vmem:[%s6315_s7 + $0x90] sm:$0xff] }
 0x3b9   : > { %2284 = vmatpush1.bf16.msra.mxu1 %v2258_v57  ;;  %v2572_v57 = vld [vmem:[%s6315_s7 + $0xb8] sm:$0xff] }
 0x3ba   : > { %2468 = vmatprep.subr.bf16.mxu1 %v4673_v12  ;;  %v4336_v12 = vpack.c.bf16 %v2567_v55, %v2565_v54 }
 0x3bc   : > { %2296 = vmatmul.mubr.bf16.vlgmr.msra.gmra.mrb[16].mxu1 %v5491_v30  ;;  %v4680_v30 = vld [vmem:[%s6313_s5 + $0x2d0] ss:$8 sps:$4 sm:$0xff]  }
 0x3bd   : > { %4006 = vmatprep.mubr.msk.bf16.mxu1 %vm1285_vm5, %v2142_v23  ;;  %2469 = vmatpush1.bf16.msra.mxu1 %v4671_v58  ;;  %v4682_v23 = vld [vmem:[%s6313_s5 + $0x2d4] ss:$8 sps:$4 sm:$0xff]   ;;  %v4338_v58 = vpack.c.bf16 %v2572_v57, %v2570_v56 }
 0x3be   : > { %2470 = vmatprep.subr.bf16.mxu1 %v4676_v60  ;;  %v2569_v60 = vld [vmem:[%s6315_s7 + $0xa0] sm:$0xff] }
 0x3c1   : > { %2471 = vmatpush1.bf16.msra.mxu1 %v4674_v62  ;;  %v2571_v62 = vld [vmem:[%s6315_s7 + $0xb0] sm:$0xff] }
 0x3c2   : > { %2472 = vmatprep.subr.bf16.mxu1 %v4679_v63  ;;  %v2574_v63 = vld [vmem:[%s6315_s7 + $0xc8] sm:$0xff] }
 0x3c4   : > { %2306 = vmatmul.mubr.bf16.gmra.mrb[32].mxu1 %v2139_v20  ;;  %v4688_v20 = vld [vmem:[%s6313_s5 + $0x2f4] ss:$8 sps:$4 sm:$0xff]  }
 0x3c5   : > { %2473 = vmatpush1.bf16.msra.mxu1 %v4677_v0  ;;  %4051 = vmatprep.mubr.msk.bf16.mxu1 %vm1285_vm5, %v5516_v38  ;;  %v4686_v38 = vld [vmem:[%s6313_s5 + $0x2f0] ss:$8 sps:$4 sm:$0xff]  }
 0x3c6   : > { %2474 = vmatprep.subr.bf16.mxu1 %v4682_v23  ;;  %v2576_v0 = vld [vmem:[%s6315_s7 + $0xd8] sm:$0xff]  ;;  %v4340_v23 = vpack.c.bf16 %v2571_v62, %v2569_v60 }
 0x3c9   : > { %2475 = vmatpush1.bf16.msra.mxu1 %v4680_v30  ;;  %v4342_v30 = vpack.c.bf16 %v2576_v0, %v2574_v63 }
 0x3ca   : > { %2476 = vmatprep.subr.bf16.mxu1 %v4685_v3  ;;  %v2573_v3 = vld [vmem:[%s6315_s7 + $0xc0] sm:$0xff] }
 0x3cd   : > { %2477 = vmatpush1.bf16.msra.mxu1 %v4683_v7  ;;  %v2575_v7 = vld [vmem:[%s6315_s7 + $0xd0] sm:$0xff] }
 0x3ce   : > { %2478 = vmatprep.subr.bf16.mxu1 %v4688_v20  ;;  %v2578_v20 = vld [vmem:[%s6315_s7 + $0xe8] sm:$0xff] }
 0x3d1   : > { %2479 = vmatpush1.bf16.msra.mxu1 %v4686_v38  ;;  %v2580_v38 = vld [vmem:[%s6315_s7 + $0xf8] sm:$0xff] }
 0x3d2   : > { %2480 = vmatprep.subr.bf16.mxu1 %v4691_v59  ;;  %v4344_v59 = vpack.c.bf16 %v2575_v7, %v2573_v3 }
 0x3d5   : > { %2481 = vmatpush1.bf16.msra.mxu1 %v4689_v8  ;;  %v4346_v8 = vpack.c.bf16 %v2580_v38, %v2578_v20  ;;  %v4704_v20 = vld [vmem:[%s6317_s9 + $0xf0] sm:$0xff]   ;;  %v4706_v38 = vld [vmem:[%s6317_s9 + $0xf8] sm:$0xff]  }
 0x3d6   : > { %2482 = vmatprep.subr.bf16.mxu1 %v4694_v6  ;;  %v2577_v6 = vld [vmem:[%s6315_s7 + $0xe0] sm:$0xff] }
 0x3d9   : > { %2483 = vmatpush1.bf16.msra.mxu1 %v4692_v1  ;;  %v2579_v1 = vld [vmem:[%s6315_s7 + $0xf0] sm:$0xff] }
 0x3da   : > { %2484 = vmatprep.subr.bf16.mxu1 %v4697_v4  ;;  %v2582_v4 = vld [vmem:[%s6315_s7 + $0x108] sm:$0xff] }
 0x3dd   : > { %2485 = vmatpush1.bf16.msra.mxu1 %v4695_v5  ;;  %v2584_v5 = vld [vmem:[%s6315_s7 + $0x118] sm:$0xff] }
 0x3de   : > { %2486 = vmatprep.subr.bf16.mxu1 %v4700_v10  ;;  %v4348_v10 = vpack.c.bf16 %v2579_v1, %v2577_v6  ;;  %v4350_v11 = vpack.c.bf16 %v2584_v5, %v2582_v4  ;;  %v4712_v6 = vld [vmem:[%s6317_s9 + $0x110] sm:$0xff]   ;;  %v4714_v1 = vld [vmem:[%s6317_s9 + $0x118] sm:$0xff]   ;;  %v4716_v4 = vld [vmem:[%s6317_s9 + $0x120] sm:$0xff]  }
 0x3e1   : > { %2487 = vmatpush1.bf16.msra.mxu1 %v4698_v15  ;;  %v2581_v15 = vld [vmem:[%s6315_s7 + $0x100] sm:$0xff] }
 0x3e2   : > { %4050 = vmatprep.subr.msk.bf16.mxu1 %vm1412_vm6, %v4049_v18  ;;  %v2583_v18 = vld [vmem:[%s6315_s7 + $0x110] sm:$0xff] }
 0x3e3   : > { %v4352_v13 = vpack.c.bf16 %v2583_v18, %v2581_v15 }
 0x3e5   : > { %2489 = vmatpush1.bf16.msra.mxu1 %v2463_v19  ;;  %v2586_v19 = vld [vmem:[%s6315_s7 + $0x128] sm:$0xff] }
 0x3e6   : > { %3267 = vmatprep.subr.bf16.mxu1 %v4831_v2 }
 0x3e8   : > { %2501 = vmatmul.mubr.bf16.vlgmr.msra.gmra.mrb[16].mxu1 %v5496_v26  ;;  %v2552_v26 = vld [vmem:[%s6315_s7 + $0x18] sm:$0xff] }
 0x3e9   : > { %4052 = vmatprep.mubr.msk.bf16.mxu1 %vm1285_vm5, %v2347_v24  ;;  %v4318_v34 = vpack.c.bf16 %v2552_v26, %v2550_v27  ;;  %v2585_v27 = vld [vmem:[%s6315_s7 + $0x120] sm:$0xff]  ;;  %v2587_v26 = vld [vmem:[%s6315_s7 + $0x130] sm:$0xff]  ;;  %3268 = vmatpush1.bf16.msra.mxu1 %v4704_v20  ;;  %v4732_v20 = vld [vmem:[%s6317_s9 + $0x48] sm:$0xff]  }
 0x3ea   : > { %3269 = vmatprep.subr.bf16.mxu1 %v4831_v2 }
 0x3eb   : > { %4319 = vmatprep.subr.bf16.mxu0 %v4318_v34  ;;  %v4356_v34 = vpack.c.bf16 %v2587_v26, %v2585_v27 }
 0x3ed   : > { %3270 = vmatpush1.bf16.msra.mxu1 %v4706_v38  ;;  %v4733_v38 = vld [vmem:[%s6317_s9 + $0xa0] sm:$0xff]  }
 0x3ee   : > { %3271 = vmatprep.subr.bf16.mxu1 %v4831_v2 }
 0x3f0   : > { %2511 = vmatmul.mubr.bf16.gmra.mrb[36].mxu1 %v2344_v21  ;;  %v2551_v21 = vld [vmem:[%s6315_s7 + $0x10] sm:$0xff] }
 0x3f1   : > { %v4320_v24 = vpack.c.bf16 %v2551_v21, %v2549_v9 }
 0x3f3   : > { %4321 = vmatpush1.bf16.msra.mxu0 %v4320_v24 }
 0x3f4   : > { %4323 = vmatprep.subr.bf16.mxu0 %v4322_v40 }
 0x3f7   : > { %4325 = vmatpush1.bf16.msra.mxu0 %v4324_v22 }
 0x3f8   : > { %4327 = vmatprep.subr.bf16.mxu0 %v4326_v14 }
 0x3fb   : > { %4329 = vmatpush1.bf16.msra.mxu0 %v4328_v46 }
 0x3fc   : > { %4331 = vmatprep.subr.bf16.mxu0 %v4330_v47 }
 0x3ff   : > { %4333 = vmatpush1.bf16.msra.mxu0 %v4332_v52 }
 0x400   : > { %4335 = vmatprep.subr.bf16.mxu0 %v4334_v53 }
 0x403   : > { %4337 = vmatpush1.bf16.msra.mxu0 %v4336_v12 }
 0x404   : > { %4339 = vmatprep.subr.bf16.mxu0 %v4338_v58 }
 0x407   : > { %4341 = vmatpush1.bf16.msra.mxu0 %v4340_v23 }
 0x408   : > { %4343 = vmatprep.subr.bf16.mxu0 %v4342_v30 }
 0x40b   : > { %4345 = vmatpush1.bf16.msra.mxu0 %v4344_v59  ;;  %v4708_v59 = vld [vmem:[%s6317_s9 + $0x100] sm:$0xff]  }
 0x40c   : > { %4347 = vmatprep.subr.bf16.mxu0 %v4346_v8  ;;  %3272 = vmatpush1.bf16.msra.mxu1 %v4708_v59  ;;  %v4710_v8 = vld [vmem:[%s6317_s9 + $0x108] sm:$0xff]  }
 0x40d   : > { %3273 = vmatprep.subr.bf16.mxu1 %v4831_v2 }
 0x40f   : > { %4349 = vmatpush1.bf16.msra.mxu0 %v4348_v10 }
 0x410   : > { %4351 = vmatprep.subr.bf16.mxu0 %v4350_v11  ;;  %3274 = vmatpush1.bf16.msra.mxu1 %v4710_v8  ;;  %v4734_v8 = vld [vmem:[%s6317_s9 + $0xa8] sm:$0xff]  }
 0x411   : > { %3275 = vmatprep.subr.bf16.mxu1 %v4831_v2 }
 0x413   : > { %v5800_v16 = vpop.f32.mrb[20].mxu1  ;;  %4353 = vmatpush1.bf16.msra.mxu0 %v4352_v13 }
 0x414   : > { %v5802_v28 = vpop.f32.mrb[21].mxu1  ;;  %3276 = vmatpush1.bf16.msra.mxu1 %v4712_v6  ;;  %v4735_v6 = vld [vmem:[%s6317_s9 + $0xb0] sm:$0xff]  }
 0x415   : > { %v1740_v25 = vpop.f32.mrb[22].mxu1  ;;  %3277 = vmatprep.subr.bf16.mxu1 %v4831_v2 }
 0x416   : > { %v1741_v36 = vpop.f32.mrb[23].mxu1  ;;  %v2588_v25 = vld [vmem:[%s6315_s7 + $0x138] sm:$0xff] }
 0x417   : > { %v4354_v36 = vpack.c.bf16 %v2588_v25, %v2586_v19 }
 0x418   : > { %3278 = vmatpush1.bf16.msra.mxu1 %v4714_v1  ;;  %v4736_v1 = vld [vmem:[%s6317_s9 + $0xb8] sm:$0xff]  }
 0x419   : > { %4355 = vmatprep.subr.bf16.mxu0 %v4354_v36  ;;  %3279 = vmatprep.subr.bf16.mxu1 %v4831_v2 }
 0x41a   : > { %4357 = vmatpush1.bf16.msra.mxu0 %v4356_v34 }
 0x41c   : > { %3280 = vmatpush1.bf16.msra.mxu1 %v4716_v4  ;;  %v4737_v4 = vld [vmem:[%s6317_s9 + $0xc0] sm:$0xff]  }
 0x41d   : > { %3281 = vmatprep.subr.bf16.mxu1 %v4831_v2 }
 0x43f   : > { %v1904_v9 = vpop.f32.mrb[24].mxu1 }
 0x440   : > { %v1905_v21 = vadd.f32 %v1904_v9, %v5800_v16  ;;  %v1906_v24 = vpop.f32.mrb[25].mxu1  ;;  %v2525_v16 = vld [vmem:[%s6314_s6] sm:$0x3] }
 0x441   : > { %v1907_v32 = vadd.f32 %v1906_v24, %v5802_v28  ;;  %v1908_v35 = vpop.f32.mrb[26].mxu1  ;;  %v2530_v28 = vrot.slane %v2525_v16, %v1219_v31  ;;  %v2534_v48 = vrot.slane %v2525_v16, %v1223_v33  ;;  %v2688_v24 = vld [vmem:[%s6316_s8] sm:$0xff] }
 0x442   : > { %v1909_v39 = vpop.f32.mrb[27].mxu1  ;;  %v2689_v35 = vld [vmem:[%s6316_s8 + $0x8] sm:$0xff] }
 0x443   : > { %v4705_v39 = vld [vmem:[%s6317_s9 + $0x58] sm:$0xff]  }
 0x46b   : > { %v2102_v40 = vpop.f32.mrb[28].mxu1 }
 0x46c   : > { %v2113_v41 = vadd.f32 %v2102_v40, %v1905_v21  ;;  %v2104_v42 = vpop.f32.mrb[29].mxu1  ;;  %v2690_v40 = vld [vmem:[%s6316_s8 + $0x10] sm:$0xf] }
 0x46d   : > { %v2114_v43 = vadd.f32 %v2104_v42, %v1907_v32  ;;  %v2106_v22 = vpop.f32.mrb[30].mxu1  ;;  %v4703_v32 = vld [vmem:[%s6317_s9 + $0x50] sm:$0xff]   ;;  %v4709_v42 = vld [vmem:[%s6317_s9 + $0x68] sm:$0xff]  }
 0x46e   : > { %v2107_v14 = vpop.f32.mrb[31].mxu1  ;;  %v4713_v22 = vld [vmem:[%s6317_s9 + $0x78] sm:$0xff]  }
 0x46f   : > { %v4715_v14 = vld [vmem:[%s6317_s9 + $0x80] sm:$0xff]  }
 0x497   : > { %v2307_v44 = vpop.f32.mrb[32].mxu1 }
 0x498   : > { %v2318_v45 = vadd.f32 %v2307_v44, %v2113_v41  ;;  %v2309_v17 = vpop.f32.mrb[33].mxu1  ;;  %v4707_v41 = vld [vmem:[%s6317_s9 + $0x60] sm:$0xff]   ;;  %v4717_v44 = vld [vmem:[%s6317_s9 + $0x88] sm:$0xff]  }
 0x499   : > { %v2319_v37 = vadd.f32 %v2309_v17, %v2114_v43  ;;  %v2311_v46 = vpop.f32.mrb[34].mxu1  ;;  %v4711_v43 = vld [vmem:[%s6317_s9 + $0x70] sm:$0xff]  }
 0x49a   : > { %v2312_v47 = vpop.f32.mrb[35].mxu1  ;;  %v4719_v17 = vld [vmem:[%s6317_s9 + $0x90] sm:$0xff]   ;;  %v4721_v46 = vld [vmem:[%s6317_s9 + $0x98] sm:$0xff]  }
 0x49b   : > { %v4722_v47 = vld [vmem:[%s6317_s9 + $0x138] sm:$0xff]  }
 0x4bb   : > { %v2502_v49 = vpop.f32.mrb[16].mxu1 }
 0x4bc   : > { %v2537_v50 = vadd.f32 %v2530_v28, %v2502_v49  ;;  %v2504_v51 = vpop.f32.mrb[17].mxu1 }
 0x4bd   : > { %v2538_v52 = vadd.f32 %v2534_v48, %v2504_v51  ;;  %v2506_v53 = vpop.f32.mrb[18].mxu1 }
 0x4be   : > { %v2508_v54 = vpop.f32.mrb[19].mxu1  ;;  %v2543_v57 = vmax.f32 %v2537_v50, 0.0  ;;  %v2539_v12 = vadd.f32 %v2530_v28, %v2506_v53 }
 0x4bf   : > { %v2544_v55 = vmax.f32 %v2538_v52, 0.0  ;;  %v2540_v56 = vadd.f32 %v2534_v48, %v2508_v54 }
 0x4c0   : > { %v2545_v29 = vmax.f32 %v2539_v12, 0.0 }
 0x4c1   : > { %v2546_v58 = vmax.f32 %v2540_v56, 0.0  ;;  %4053 = vmatprep.mubr.msk.f32.mxu0 %vm2589_vm11, %v2544_v55 }
 0x4c2   : > { %2664 = vmatmul.mubr.f32.vlgmr.msra.gmra.mrb[8].mxu0 %v2543_v57 }
 0x4c3   : > { %v2512_v60 = vpop.f32.mrb[36].mxu1  ;;  %4054 = vmatprep.mubr.msk.f32.mxu0 %vm2589_vm11, %v2546_v58 }
 0x4c4   : > { %v2523_v31 = vadd.f32 %v2512_v60, %v2318_v45  ;;  %v2514_v33 = vpop.f32.mrb[37].mxu1  ;;  %v4718_v45 = vld [vmem:[%s6317_s9 + $0x128] sm:$0xff]   ;;  %v4723_v60 = vld [vmem:[%s6317_s9] sm:$0xff]  }
 0x4c5   : > { %v2524_v62 = vadd.f32 %v2514_v33, %v2319_v37  ;;  %v2516_v63 = vpop.f32.mrb[38].mxu1  ;;  %3282 = vmatpush1.bf16.msra.mxu1 %v4718_v45  ;;  %v4720_v37 = vld [vmem:[%s6317_s9 + $0x130] sm:$0xff]   ;;  %v4724_v33 = vld [vmem:[%s6317_s9 + $0x8] sm:$0xff]  }
 0x4c6   : > { %v2541_v0 = vadd.f32 %v2530_v28, %v2523_v31  ;;  %v2517_v23 = vpop.f32.mrb[39].mxu1  ;;  %2670 = vmatmul.mubr.f32.gmra.mrb[10].mxu0 %v2545_v29  ;;  %3283 = vmatprep.subr.bf16.mxu1 %v4831_v2  ;;  %v4726_v63 = vld [vmem:[%s6317_s9 + $0x18] sm:$0xff]   ;;  %v4759_v45 = vld [vmem:[%s6319_s11 + $0x30] sm:$0xff]  }
 0x4c7   : > { %v2542_v30 = vadd.f32 %v2534_v48, %v2524_v62  ;;  %v4725_v62 = vld [vmem:[%s6317_s9 + $0x10] sm:$0xff]   ;;  %v4728_v23 = vld [vmem:[%s6317_s9 + $0x28] sm:$0xff]  }
 0x4c8   : > { %v2547_v7 = vmax.f32 %v2541_v0, 0.0  ;;  %v4727_v0 = vld [vmem:[%s6317_s9 + $0x20] sm:$0xff]  }
 0x4c9   : > { %v2548_v3 = vmax.f32 %v2542_v30, 0.0  ;;  %3284 = vmatpush1.bf16.msra.mxu1 %v4720_v37  ;;  %v4729_v30 = vld [vmem:[%s6317_s9 + $0x30] sm:$0xff]  }
 0x4ca   : > { %3285 = vmatprep.subr.bf16.mxu1 %v4831_v2 }
 0x4cb   : > { %4055 = vmatprep.mubr.msk.f32.mxu0 %vm2589_vm11, %v2548_v3 }
 0x4cc   : > { %2676 = vmatmul.mubr.f32.gmra.mrb[12].mxu0 %v2547_v7 }
 0x4cd   : > { %2771 = vmatprep.mubr.f32.mxu0 %v4832_v61  ;;  %3286 = vmatpush1.bf16.msra.mxu1 %v4722_v47 }
 0x4ce   : > { %4232 = vmatprep.subr.bf16.mxu1 %v4832_v61 }
 0x595   : > { %v2665_v5 = vpop.f32.mrb[8].mxu0 }
 0x596   : > { %v2667_v10 = vpop.f32.mrb[9].mxu0  ;;  %v5971_v25 = vmax.f32 %v2543_v57, %v2665_v5  ;;  %v4738_v5 = vld [vmem:[%s6317_s9 + $0xc8] sm:$0xff]  }
 0x597   : > { %v5967_v13 = vmax.f32 %v2544_v55, %v2667_v10  ;;  %v4739_v10 = vld [vmem:[%s6317_s9 + $0xd0] sm:$0xff]  }
 0x599   : > { %v2671_v11 = vpop.f32.mrb[10].mxu0 }
 0x59a   : > { %v5965_v15 = vmax.f32 %v2545_v29, %v2671_v11  ;;  %v2673_v18 = vpop.f32.mrb[11].mxu0  ;;  %v4740_v11 = vld [vmem:[%s6317_s9 + $0xd8] sm:$0xff]  }
 0x59b   : > { %v5969_v19 = vmax.f32 %v2546_v58, %v2673_v18  ;;  %v4742_v18 = vld [vmem:[%s6317_s9 + $0xe8] sm:$0xff]  }
 0x59c   : > { %v4360_v27 = vpack.c.bf16 %v5965_v15, %v5971_v25 }
 0x59d   : > { %v4358_v36 = vpack.c.bf16 %v5969_v19, %v5967_v13 }
 0x59f   : > { %v2677_v26 = vpop.f32.mrb[12].mxu0  ;;  %4359 = vmatprep.subr.bf16.mxu0 %v4358_v36 }
 0x5a0   : > { %v2679_v34 = vpop.f32.mrb[13].mxu0  ;;  %4361 = vmatpush1.bf16.msra.mxu0 %v4360_v27  ;;  %v5979_v21 = vmax.f32 %v2547_v7, %v2677_v26  ;;  %v4731_v7 = vld [vmem:[%s6317_s9 + $0x40] sm:$0xff]   ;;  %v4744_v27 = vld [vmem:[%s6317_s9 + $0x148] sm:$0xff]   ;;  %v4745_v26 = vld [vmem:[%s6317_s9 + $0x150] sm:$0xff]  }
 0x5a1   : > { %v5977_v9 = vmax.f32 %v2548_v3, %v2679_v34  ;;  %v4730_v3 = vld [vmem:[%s6317_s9 + $0x38] sm:$0xff]  }
 0x5a2   : > { %v4746_v34 = vld [vmem:[%s6317_s9 + $0x158] sm:$0xff]  }
 0x5a3   : > { %4056 = vmatprep.subr.msk.mxu0 %vm1412_vm6, %v5977_v9 }
 0x5a4   : > { %4057 = vmatpush1.msk.msra.mxu0 %vm1412_vm6, %v5979_v21 }
 0x5a5   : > { %4058 = vmatmul.mubr.msk.f32.vlgmr.msra.gmra.mrb[14].mxu0 %vm2691_vm12, %v2688_v24  ;;  %2909 = vmatprep.subr.bf16.mxu0 %v4831_v2  ;;  %v4748_v24 = vld [vmem:[%s6317_s9 + $0x168] sm:$0xff]  }
 0x5a6   : > { %2777 = vmatprep.mubr.f32.mxu0 %v4832_v61  ;;  %2910 = vmatpush1.bf16.msra.mxu0 %v4703_v32  ;;  %v4749_v32 = vld [vmem:[%s6317_s9 + $0x170] sm:$0xff]  }
 0x5a7   : > { %2911 = vmatprep.subr.bf16.mxu0 %v4831_v2 }
 0x5a9   : > { %4059 = vmatmul.mubr.msk.f32.gmra.mrb[16].mxu0 %vm2691_vm12, %v2689_v35  ;;  %v4750_v35 = vld [vmem:[%s6317_s9 + $0x178] sm:$0xff]  }
 0x5aa   : > { %2783 = vmatprep.mubr.f32.mxu0 %v4832_v61  ;;  %2912 = vmatpush1.bf16.msra.mxu0 %v4705_v39  ;;  %v4751_v39 = vld [vmem:[%s6317_s9 + $0x180] sm:$0xff]  }
 0x5ab   : > { %2913 = vmatprep.subr.bf16.mxu0 %v4831_v2 }
 0x5ad   : > { %4060 = vmatmul.mubr.msk.f32.gmra.mrb[18].mxu0 %vm2691_vm12, %v2690_v40  ;;  %v4752_v40 = vld [vmem:[%s6317_s9 + $0x188] sm:$0xff]  }
 0x5ae   : > { %2914 = vmatpush1.bf16.msra.mxu0 %v4707_v41 }
 0x5af   : > { %2915 = vmatprep.subr.bf16.mxu0 %v4831_v2 }
 0x5b2   : > { %2916 = vmatpush1.bf16.msra.mxu0 %v4709_v42 }
 0x5b3   : > { %2917 = vmatprep.subr.bf16.mxu0 %v4831_v2 }
 0x5b6   : > { %2918 = vmatpush1.bf16.msra.mxu0 %v4711_v43  ;;  %v4753_v43 = vld [vmem:[%s6319_s11] sm:$0xff]  }
 0x5b7   : > { %2919 = vmatprep.subr.bf16.mxu0 %v4831_v2 }
 0x5ba   : > { %2920 = vmatpush1.bf16.msra.mxu0 %v4713_v22  ;;  %v4754_v22 = vld [vmem:[%s6319_s11 + $0x8] sm:$0xff]  }
 0x5bb   : > { %2921 = vmatprep.subr.bf16.mxu0 %v4831_v2 }
 0x5be   : > { %2922 = vmatpush1.bf16.msra.mxu0 %v4715_v14  ;;  %v4757_v14 = vld [vmem:[%s6319_s11 + $0x20] sm:$0xff]  }
 0x5bf   : > { %2923 = vmatprep.subr.bf16.mxu0 %v4831_v2 }
 0x5c2   : > { %2924 = vmatpush1.bf16.msra.mxu0 %v4717_v44  ;;  %v4758_v44 = vld [vmem:[%s6319_s11 + $0x28] sm:$0xff]  }
 0x5c3   : > { %2925 = vmatprep.subr.bf16.mxu0 %v4831_v2 }
 0x5c6   : > { %2926 = vmatpush1.bf16.msra.mxu0 %v4719_v17  ;;  %v4760_v17 = vld [vmem:[%s6319_s11 + $0x38] ss:$0 sps:$4 sm:$0xff]  }
 0x5c7   : > { %2927 = vmatprep.subr.bf16.mxu0 %v4831_v2  ;;  %v3503_v37 = vsel %vm1412_vm6, %v4760_v17, 0 }
 0x5ca   : > { %2928 = vmatpush1.bf16.msra.mxu0 %v4721_v46 }
 0x5cb   : > { %3012 = vmatprep.subr.bf16.mxu0 %v4831_v2 }
 0x678   : > { %v2773_v16 = vpop.f32.mrb[14].mxu0 }
 0x679   : > { %v2775_v28 = vpop.f32.mrb[15].mxu0  ;;  %v2790_v49 = vmax.f32 %v5971_v25, %v2773_v16 }
 0x67a   : > { %v2791_v52 = vmax.f32 %v5967_v13, %v2775_v28 }
 0x67c   : > { %v2779_v48 = vpop.f32.mrb[16].mxu0 }
 0x67d   : > { %v2792_v50 = vmax.f32 %v5965_v15, %v2779_v48  ;;  %v2781_v51 = vpop.f32.mrb[17].mxu0  ;;  %v4741_v15 = vld [vmem:[%s6317_s9 + $0xe0] sm:$0xff]  }
 0x67e   : > { %v2793_v53 = vmax.f32 %v5969_v19, %v2781_v51  ;;  %v4743_v19 = vld [vmem:[%s6317_s9 + $0x140] sm:$0xff]  }
 0x67f   : > { %v6056_v54 = vpack.c.bf16 %v2792_v50, %v2790_v49  ;;  %v4761_v48 = vld [vmem:[%s6321_s13] sm:$0xff]  }
 0x680   : > { %v2797_v55 = vpack.c.bf16 %v2793_v53, %v2791_v52  ;;  %v6058_v56 = vpop.f32.mrb[18].mxu0  ;;  %v4762_v53 = vld [vmem:[%s6321_s13 + $0x8] sm:$0xff]  }
 0x681   : > { %v6060_v57 = vpop.f32.mrb[19].mxu0  ;;  %v2843_v29 = vrot.slane %v6056_v54, 2  ;;  %v3201_v31 = vrot.slane %v6056_v54, 6  ;;  %v3073_v25 = vrot.slane %v6056_v54, 4  ;;  %v2794_v41 = vmax.f32 %v5979_v21, %v6058_v56  ;;  %v4756_v21 = vld [vmem:[%s6319_s11 + $0x18] sm:$0xff]  }
 0x682   : > { %v2844_v12 = vrot.slane %v2797_v55, 2  ;;  %v3202_v58 = vrot.slane %v2797_v55, 6  ;;  %v3074_v59 = vrot.slane %v2797_v55, 4  ;;  %v2795_v13 = vmax.f32 %v5977_v9, %v6060_v57  ;;  %v4747_v9 = vld [vmem:[%s6317_s9 + $0x160] sm:$0xff]  }
 0x683   : > { %v2798_v42 = vpack.c.bf16 %v2794_v41, %v2794_v41 }
 0x684   : > { %4091 = vmatprep.mubr.msk.bf16.mxu0 %vm2589_vm11, %v2844_v12  ;;  %4164 = vmatprep.mubr.msk.bf16.mxu1 %vm2589_vm11, %v3202_v58  ;;  %v2799_v36 = vpack.c.bf16 %v2795_v13, %v2795_v13 }
 0x685   : > { %2942 = vmatmul.mubr.bf16.vlgmr.msra.gmra.mrb[20].mxu0 %v2843_v29  ;;  %3300 = vmatmul.mubr.bf16.vlgmr.msra.gmra.mrb[40].mxu1 %v3201_v31 }
 0x686   : > { %3013 = vmatpush1.bf16.msra.mxu0 %v4723_v60  ;;  %4102 = vmatprep.mubr.msk.bf16.mxu0 %vm2589_vm11, %v2797_v55  ;;  %v4764_v55 = vld [vmem:[%s6321_s13 + $0x18] sm:$0xff]  }
 0x687   : > { %3014 = vmatprep.subr.bf16.mxu0 %v4831_v2  ;;  %4233 = vmatpush3.bf16.msra.mxu1 %v4753_v43 }
 0x688   : > { %4234 = vmatprep.subr.bf16.mxu1 %v4832_v61  ;;  %4248 = vmatprep.mubr.msk.bf16.mxu1 %vm4834_vm13, %v4832_v61 }
 0x68a   : > { %3015 = vmatpush1.bf16.msra.mxu0 %v4724_v33 }
 0x68b   : > { %3016 = vmatprep.subr.bf16.mxu0 %v4831_v2  ;;  %4235 = vmatpush3.bf16.msra.mxu1 %v4754_v22 }
 0x68c   : > { %4236 = vmatprep.subr.bf16.mxu1 %v4832_v61 }
 0x68e   : > { %3017 = vmatpush1.bf16.msra.mxu0 %v4725_v62 }
 0x68f   : > { %3018 = vmatprep.subr.bf16.mxu0 %v4831_v2 }
 0x692   : > { %3019 = vmatpush1.bf16.msra.mxu0 %v4726_v63 }
 0x693   : > { %3020 = vmatprep.subr.bf16.mxu0 %v4831_v2 }
 0x696   : > { %3021 = vmatpush1.bf16.msra.mxu0 %v4727_v0 }
 0x697   : > { %3022 = vmatprep.subr.bf16.mxu0 %v4831_v2 }
 0x69a   : > { %3023 = vmatpush1.bf16.msra.mxu0 %v4728_v23 }
 0x69b   : > { %3024 = vmatprep.subr.bf16.mxu0 %v4831_v2 }
 0x69e   : > { %3025 = vmatpush1.bf16.msra.mxu0 %v4729_v30  ;;  %v3433_v30 = vld [vmem:[%s6318_s10] sm:$0x1] }
 0x69f   : > { %3026 = vmatprep.subr.bf16.mxu0 %v4831_v2 }
 0x6a2   : > { %3027 = vmatpush1.bf16.msra.mxu0 %v4730_v3 }
 0x6a3   : > { %3028 = vmatprep.subr.bf16.mxu0 %v4831_v2 }
 0x6a6   : > { %3029 = vmatpush1.bf16.msra.mxu0 %v4731_v7 }
 0x6a7   : > { %3030 = vmatprep.subr.bf16.mxu0 %v4831_v2 }
 0x6aa   : > { %3031 = vmatpush1.bf16.msra.mxu0 %v4732_v20 }
 0x6ab   : > { %3139 = vmatprep.subr.bf16.mxu0 %v4831_v2 }
 0x6ad   : > { %3045 = vmatmul.mubr.bf16.vlgmr.msra.gmra.mrb[24].mxu0 %v6056_v54  ;;  %v4763_v54 = vld [vmem:[%s6321_s13 + $0x10] sm:$0xff]  }
 0x6ae   : > { %3140 = vmatpush1.bf16.msra.mxu0 %v4733_v38  ;;  %4133 = vmatprep.mubr.msk.bf16.mxu0 %vm2589_vm11, %v3074_v59 }
 0x6af   : > { %3141 = vmatprep.subr.bf16.mxu0 %v4831_v2 }
 0x6b2   : > { %3142 = vmatpush1.bf16.msra.mxu0 %v4734_v8 }
 0x6b3   : > { %3143 = vmatprep.subr.bf16.mxu0 %v4831_v2 }
 0x6b6   : > { %3144 = vmatpush1.bf16.msra.mxu0 %v4735_v6 }
 0x6b7   : > { %3145 = vmatprep.subr.bf16.mxu0 %v4831_v2 }
 0x6ba   : > { %3146 = vmatpush1.bf16.msra.mxu0 %v4736_v1  ;;  %v4765_v1 = vld [vmem:[%s6321_s13 + $0x20] sm:$0xff]  }
 0x6bb   : > { %3147 = vmatprep.subr.bf16.mxu0 %v4831_v2 }
 0x6be   : > { %3148 = vmatpush1.bf16.msra.mxu0 %v4737_v4  ;;  %v4766_v4 = vld [vmem:[%s6321_s13 + $0x28] ss:$0 sps:$4 sm:$0x33]  }
 0x6bf   : > { %3149 = vmatprep.subr.bf16.mxu0 %v4831_v2 }
 0x6c2   : > { %3150 = vmatpush1.bf16.msra.mxu0 %v4738_v5  ;;  %v3598_v5 = vsel %vm3596_vm15, %v4766_v4, 0 }
 0x6c3   : > { %3151 = vmatprep.subr.bf16.mxu0 %v4831_v2 }
 0x6c6   : > { %3152 = vmatpush1.bf16.msra.mxu0 %v4739_v10  ;;  %v3452_v10 = vld [vmem:[%s6320_s12] sm:$0x1] }
 0x6c7   : > { %3153 = vmatprep.subr.bf16.mxu0 %v4831_v2 }
 0x6ca   : > { %3154 = vmatpush1.bf16.msra.mxu0 %v4740_v11 }
 0x6cb   : > { %3155 = vmatprep.subr.bf16.mxu0 %v4831_v2 }
 0x6ce   : > { %3156 = vmatpush1.bf16.msra.mxu0 %v4741_v15 }
 0x6cf   : > { %3157 = vmatprep.subr.bf16.mxu0 %v4831_v2 }
 0x6d2   : > { %3158 = vmatpush1.bf16.msra.mxu0 %v4742_v18 }
 0x6d3   : > { %3392 = vmatprep.subr.bf16.mxu0 %v4831_v2 }
 0x6d5   : > { %3172 = vmatmul.mubr.bf16.vlgmr.msra.gmra.mrb[28].mxu0 %v3073_v25 }
 0x6d6   : > { %3393 = vmatpush1.bf16.msra.mxu0 %v4743_v19  ;;  %4195 = vmatprep.mubr.msk.bf16.mxu0 %vm2589_vm11, %v2799_v36  ;;  %v3558_v36 = vld [vmem:[%s6322_s14] sm:$0x1] }
 0x6d7   : > { %3394 = vmatprep.subr.bf16.mxu0 %v4831_v2 }
 0x6da   : > { %3395 = vmatpush1.bf16.msra.mxu0 %v4744_v27 }
 0x6db   : > { %3396 = vmatprep.subr.bf16.mxu0 %v4831_v2 }
 0x6de   : > { %3397 = vmatpush1.bf16.msra.mxu0 %v4745_v26 }
 0x6df   : > { %3398 = vmatprep.subr.bf16.mxu0 %v4831_v2 }
 0x6e2   : > { %3399 = vmatpush1.bf16.msra.mxu0 %v4746_v34 }
 0x6e3   : > { %3400 = vmatprep.subr.bf16.mxu0 %v4831_v2 }
 0x6e6   : > { %3401 = vmatpush1.bf16.msra.mxu0 %v4747_v9 }
 0x6e7   : > { %3402 = vmatprep.subr.bf16.mxu0 %v4831_v2 }
 0x6ea   : > { %3403 = vmatpush1.bf16.msra.mxu0 %v4748_v24 }
 0x6eb   : > { %3404 = vmatprep.subr.bf16.mxu0 %v4831_v2 }
 0x6ee   : > { %3405 = vmatpush1.bf16.msra.mxu0 %v4749_v32 }
 0x6ef   : > { %3406 = vmatprep.subr.bf16.mxu0 %v4831_v2 }
 0x6f2   : > { %3407 = vmatpush1.bf16.msra.mxu0 %v4750_v35 }
 0x6f3   : > { %3408 = vmatprep.subr.bf16.mxu0 %v4831_v2 }
 0x6f6   : > { %3409 = vmatpush1.bf16.msra.mxu0 %v4751_v39 }
 0x6f7   : > { %3410 = vmatprep.subr.bf16.mxu0 %v4831_v2  ;;  %v4755_v2 = vld [vmem:[%s6319_s11 + $0x10] sm:$0xff]  }
 0x6f8   : > { %4237 = vmatpush3.bf16.msra.mxu1 %v4755_v2 }
 0x6f9   : > { %4238 = vmatprep.subr.bf16.mxu1 %v4832_v61 }
 0x6fa   : > { %3411 = vmatpush1.bf16.msra.mxu0 %v4752_v40 }
 0x6fb   : > { %4252 = vmatprep.subr.bf16.mxu0 %v4832_v61 }
 0x6fc   : > { %4239 = vmatpush3.bf16.msra.mxu1 %v4756_v21 }
 0x6fd   : > { %3425 = vmatmul.mubr.bf16.vlgmr.msra.gmra.mrb[32].mxu0 %v2798_v42  ;;  %4240 = vmatprep.subr.bf16.mxu1 %v4832_v61 }
 0x6fe   : > { %4264 = vmatprep.mubr.msk.bf16.mxu0 %vm4834_vm13, %v4832_v61  ;;  %4253 = vmatpush3.bf16.msra.mxu0 %v4761_v48 }
 0x6ff   : > { %4254 = vmatprep.subr.bf16.mxu0 %v4832_v61 }
 0x700   : > { %4241 = vmatpush3.bf16.msra.mxu1 %v4757_v14 }
 0x701   : > { %4242 = vmatprep.subr.bf16.mxu1 %v4832_v61 }
 0x702   : > { %4255 = vmatpush3.bf16.msra.mxu0 %v4762_v53 }
 0x703   : > { %4256 = vmatprep.subr.bf16.mxu0 %v4832_v61 }
 0x704   : > { %4243 = vmatpush3.bf16.msra.mxu1 %v4758_v44 }
 0x705   : > { %4244 = vmatprep.subr.bf16.mxu1 %v4832_v61 }
 0x706   : > { %4257 = vmatpush3.bf16.msra.mxu0 %v4763_v54 }
 0x707   : > { %4258 = vmatprep.subr.bf16.mxu0 %v4832_v61 }
 0x708   : > { %4245 = vmatpush3.bf16.msra.mxu1 %v4759_v45 }
 0x709   : > { %4246 = vmatprep.subr.bf16.mxu1 %v4832_v61 }
 0x70a   : > { %4259 = vmatpush3.bf16.msra.mxu0 %v4764_v55 }
 0x70b   : > { %4260 = vmatprep.subr.bf16.mxu0 %v4832_v61 }
 0x70c   : > { %4247 = vmatpush3.bf16.msra.mxu1 %v3503_v37 }
 0x70e   : > { %4261 = vmatpush3.bf16.msra.mxu0 %v4765_v1 }
 0x70f   : > { %4262 = vmatprep.subr.bf16.mxu0 %v4832_v61 }
 0x712   : > { %4263 = vmatpush3.bf16.msra.mxu0 %v3598_v5 }
 0x758   : > { %v2943_v46 = vpop.f32.mrb[20].mxu0  ;;  %v3301_v47 = vpop.f32.mrb[40].mxu1 }
 0x759   : > { %v2945_v16 = vpop.f32.mrb[21].mxu0  ;;  %v3303_v28 = vpop.f32.mrb[41].mxu1 }
 0x75a   : > { %v2946_v49 = vpop.f32.mrb[22].mxu0  ;;  %v3304_v50 = vpop.f32.mrb[42].mxu1 }
 0x75b   : > { %v2947_v51 = vpop.f32.mrb[23].mxu0  ;;  %v3305_v52 = vpop.f32.mrb[43].mxu1 }
 0x780   : > { %v3046_v56 = vpop.f32.mrb[24].mxu0 }
 0x781   : > { %v3047_v57 = vadd.f32 %v3046_v56, %v2943_v46  ;;  %v3048_v12 = vpop.f32.mrb[25].mxu0 }
 0x782   : > { %v3049_v58 = vpop.f32.mrb[26].mxu0 }
 0x783   : > { %v3050_v60 = vpop.f32.mrb[27].mxu0 }
 0x7a8   : > { %v3173_v29 = vpop.f32.mrb[28].mxu0 }
 0x7a9   : > { %v3179_v31 = vadd.f32 %v3173_v29, %v3047_v57  ;;  %v3175_v33 = vpop.f32.mrb[29].mxu0 }
 0x7aa   : > { %v3176_v62 = vpop.f32.mrb[30].mxu0 }
 0x7ab   : > { %v3177_v63 = vpop.f32.mrb[31].mxu0  ;;  %v3307_v0 = vadd.f32 %v3301_v47, %v3179_v31 }
 0x7d0   : > { %v3426_v23 = vpop.f32.mrb[32].mxu0 }
 0x7d1   : > { %v3432_v3 = vadd.f32 %v3426_v23, %v3307_v0  ;;  %v3428_v7 = vpop.f32.mrb[33].mxu0 }
 0x7d2   : > { %v3429_v20 = vpop.f32.mrb[34].mxu0 }
 0x7d3   : > { %v3434_v38 = vadd.f32 %v3433_v30, %v3432_v3  ;;  %v3430_v59 = vpop.f32.mrb[35].mxu0 }
 0x7d5   : > { %v3435_v8 = vmax.f32 %v3434_v38, 0.0 }
 0x7d7   : > { %v3436_v6 = vpack.c.bf16 %v3435_v8, %v3435_v8 }
 0x7d9   : > { %4249 = vmatmul.mubr.msk.bf16.vlgmr.msra.gmra.mrb[44].mxu1 %vm3498_vm14, %v3436_v6 }
 0x8ac   : > { %v3539_v11 = vpop.f32.mrb[44].mxu1 }
 0x8ad   : > { %v3540_v15 = vadd.f32 %v3539_v11, %v3452_v10  ;;  %v4250_v18 = vpop.f32.mrb[45].mxu1 }
 0x8ae   : > { %v3542_v13 = vpop.f32.mrb[46].mxu1 }
 0x8af   : > { %v3545_v19 = vmax.f32 %v3540_v15, 0.0  ;;  %v4251_v25 = vpop.f32.mrb[47].mxu1 }
 0x8b1   : > { %v3546_v61 = vpack.c.bf16 %v3545_v19, %v3545_v19 }
 0x8b3   : > { %4265 = vmatmul.mubr.msk.bf16.vlgmr.msra.gmra.mrb[36].mxu0 %vm3592_vm0, %v3546_v61 }
 0x986   : > { %v3634_v27 = vpop.f32.mrb[36].mxu0 }
 0x987   : > { %v3635_v26 = vadd.f32 %v3634_v27, %v3558_v36  ;;  %v4266_v34 = vpop.f32.mrb[37].mxu0 }
 0x988   : > { %v3637_v9 = vpop.f32.mrb[38].mxu0 }
 0x989   : > { %v4267_v24 = vpop.f32.mrb[39].mxu0  ;;  %3641 = vst.msk [vmem:[%s486_s23] sm:$0x1] %vm3640_vm1, %v3635_v26 }
 0x98a   : > { %4780 = shalt.err (!%p4777_p3)
}
 0x98b   : > { %s4781_s29 = scalar_lea.hbm %s6266_s21, 16  ;;  %s4785_s23 = scalar_lea.hbm %s6340_s24, 32 }
 0x98c   : > { %p4782_p4 = scmp.ne.s32.totalorder %s6266_s21, %s4781_s29  ;;  %p4786_p9 = scmp.lt.u32.totalorder %s6266_s21, %s6340_s24 }
 0x98d   : > { %p4787_p10 = scmp.lt.u32.totalorder %s4785_s23, %s4781_s29  ;;  %p4789_p12 = scmp.lt.u32.totalorder %s4781_s29, %s6266_s21 }
 0x98e   : > { %p4783_p7 = pnand %p4782_p4, %p4954_p5 }
 0x98f   : > { %p4788_p11 = por %p4787_p10, %p4786_p9 }
 0x990   : > { %p4784_p8 = pneg %p4783_p7 }
 0x991   : > { %p4790_p13 = por %p4789_p12, %p4788_p11 }
 0x993   : > { %p4791_p0 = pnand %p4790_p13, %p4784_p8 }
 0x995   : > { %4794 = shalt.err (!%p4791_p0)
}
 0x996   : > { %4410 = dma.vmem_to_hbm [thread:$0]  (%p4954_p5), %s6268_s25, 16, %s6266_s21, %s3643_s22  }
 0x997 PF: > { %s6341_s27 = sld [smem:[#allocation7_spill]]  ;;  %s6342_s15 = sld [smem:[#allocation5_spill]] }
 0x99d   : > { %p4416_p1 = scmp.ge.s32.totalorder %s6341_s27, 2  ;;  %s3667_s30 = sand.u32 1, %s6342_s15  }
 0x99e   : > { %s3668_s16 = scalar_lea.sflag [#allocation3], %s3667_s30 }
 0x99f   : > { %p4413_p2 = pnand %p4416_p1, %p4958_p6 }
 0x9a1   : > { %4812 = dma.done.wait (!%p4413_p2), %s3668_s16, 16  }
 0x9a2   : > { %4814 = vsyncadd (!%p4413_p2), %s3668_s16, 4294967280  ;;  %s6344_s21 = sld [smem:[#allocation8_spill]]  ;;  %s6345_s29 = sld [smem:[#allocation6_spill]] }
 0x9a3   : > { %s6346_s20 = sld [smem:[#allocation9_spill]]  ;;  %s6347_s18 = smov %s4821_s19 }
 0x9a8   : > { %p25_p3 = scmp.ge.s32.totalorder %s6344_s21, 4   ;;  %s6348_s19 = smov %s6345_s29 }
 0x9aa   :  { %27 = sbr.rel (!%p25_p3) target bundleno = 5 (0x5), region = 127 }
 0x9b1   :  { %3672 = vsyncpa [#allocation3], 1 }
 0x9b2   :  { %3674 = vsyncpa [#allocation3 + $0x1], 1 }

</bundles_post_ra>
